<compile_context>
chip_gen: v7x
topology: tpu7x:2x2x1
jax: 0.10.0
libtpu: 0.0.40
codegen_flags: <defaults>
</compile_context>

<pallas_src>
import numpy as np
import jax
import jax.numpy as jnp
from jax.experimental import pallas as pl
from jax.experimental.pallas import tpu as pltpu


# ----------------------------------------------------------------------------
# Parameter construction (matches the PyTorch init of the use_siren=False path)
# ----------------------------------------------------------------------------
def init_separated_brdf_params(key, in_dims, hidden_dims, head_dims=(3, 1, 1)):
    """Per-net raw parameters.

    hidden Linear: W ~ U(-1/sqrt(fan_in), 1/sqrt(fan_in)) (torch default bound),
                   b = 0  (nn.init.zeros_)
    last   Linear: W ~ U(-1e-5, 1e-5), bias=False
    weight_norm folded (identity at init).
    """
    dims = [in_dims] + list(hidden_dims)
    nets = []
    for od in head_dims:
        hidden = []
        for l in range(len(hidden_dims)):
            key, kw = jax.random.split(key)
            bound = 1.0 / np.sqrt(dims[l])
            W = jax.random.uniform(kw, (dims[l + 1], dims[l]),
                                   minval=-bound, maxval=bound,
                                   dtype=jnp.float32)
            b = jnp.zeros((dims[l + 1],), jnp.float32)
            hidden.append((W, b))
        key, kw = jax.random.split(key)
        W_last = jax.random.uniform(kw, (od, dims[-1]),
                                    minval=-1e-5, maxval=1e-5,
                                    dtype=jnp.float32)
        nets.append({"hidden": hidden, "last": W_last})
    return nets


def pack_params_fused(nets, head_dims=(3, 1, 1), compute_dtype=jnp.float32):
    """One-time packing: fuse the three sub-nets into a single block-diagonal
    MLP, pre-transposed to (in, out).  The kernel then only runs ONE matmul
    per layer and the concat of the three heads is produced directly by the
    final (3*H, 5) matmul."""
    num_nets = len(nets)
    num_hidden = len(nets[0]["hidden"])
    out_total = int(sum(head_dims))
    head_off = np.cumsum([0] + list(head_dims))[:-1]

    packed = []
    for l in range(num_hidden):
        Ws = [np.asarray(net["hidden"][l][0]) for net in nets]   # (out_l, in_l)
        bs = [np.asarray(net["hidden"][l][1]) for net in nets]   # (out_l,)
        in_l, out_l = Ws[0].shape[1], Ws[0].shape[0]
        if l == 0:
            # All nets consume the same input x -> concat along output columns.
            W_f = np.concatenate([W.T for W in Ws], axis=1)       # (in, 3*out_l)
        else:
            W_f = np.zeros((num_nets * in_l, num_nets * out_l), np.float32)
            for n, W in enumerate(Ws):
                W_f[n * in_l:(n + 1) * in_l, n * out_l:(n + 1) * out_l] = W.T
        b_f = np.concatenate(bs).reshape(1, -1)                   # (1, 3*out_l)
        packed.append(jnp.asarray(W_f, compute_dtype))
        packed.append(jnp.asarray(b_f, jnp.float32))

    H = np.asarray(nets[0]["last"]).shape[1]
    W_last_f = np.zeros((num_nets * H, out_total), np.float32)
    for n, net in enumerate(nets):
        Wl = np.asarray(net["last"])                              # (od, H)
        od = Wl.shape[0]
        W_last_f[n * H:(n + 1) * H,
                 int(head_off[n]):int(head_off[n]) + od] = Wl.T
    packed.append(jnp.asarray(W_last_f, compute_dtype))
    return tuple(packed)


# ----------------------------------------------------------------------------
# Fused kernel
# ----------------------------------------------------------------------------
def _make_kernel(num_hidden):
    n_param = 2 * num_hidden + 1          # (W, b) per hidden layer + W_last

    def kernel(x_ref, *refs):
        p = refs[:n_param]
        act_ref = refs[n_param]
        pre_ref = refs[n_param + 1]

        h = x_ref[...]                                  # (TILE_B, in) f32
        for l in range(num_hidden):
            w = p[2 * l][...]                           # (in_f, out_f) compute dtype
            b = p[2 * l + 1][...]                       # (1, out_f)    f32
            z = jnp.dot(h.astype(w.dtype), w,
                        preferred_element_type=jnp.float32) + b
            h = jnp.maximum(z, 0.0)                     # ReLU (VPU, f32)
        w_last = p[2 * num_hidden][...]                 # (3*H, 5) head-packed
        pre = jnp.dot(h.astype(w_last.dtype), w_last,
                      preferred_element_type=jnp.float32)
        pre_ref[...] = pre.astype(pre_ref.dtype)
        act_ref[...] = jnp.tanh(pre).astype(act_ref.dtype)   # EUP

    return kernel


# ----------------------------------------------------------------------------
# Wrapper
# ----------------------------------------------------------------------------
def separated_brdf_mlp_forward(points, packed, *, num_hidden, tile_b=1024):
    """points: (B, in_dims) f32; packed: output of pack_params_fused.
    Returns (tanh_output (B, 5), pre_activation_output (B, 5))."""
    # TODO(synk): ComposedEmbedder spec not provided; Identity embedding only.
    # TODO(synk): skip_connection concat branch not implemented (default = ()).
    x = points
    B, d_in = x.shape
    out_total = int(packed[-1].shape[-1])               # == 5

    tile_b = max(8, (min(tile_b, B) // 8) * 8)
    b_pad = pl.cdiv(B, tile_b) * tile_b
    if b_pad != B:
        x = jnp.pad(x, ((0, b_pad - B), (0, 0)))

    const_map = lambda i: (0, 0)
    in_specs = [pl.BlockSpec((tile_b, d_in), lambda i: (i, 0))]
    in_specs += [pl.BlockSpec(p.shape, const_map) for p in packed]
    out_specs = (pl.BlockSpec((tile_b, out_total), lambda i: (i, 0)),
                 pl.BlockSpec((tile_b, out_total), lambda i: (i, 0)))

    # Advisory cost hint for the XLA scheduler.
    flops = 0
    weight_bytes = 0
    for idx, p in enumerate(packed):
        weight_bytes += int(p.size) * p.dtype.itemsize
        if idx % 2 == 0 or idx == len(packed) - 1:       # weights (not biases)
            if p.ndim == 2 and p.shape[0] > 1:
                flops += 2 * b_pad * int(p.shape[0]) * int(p.shape[1])
    bytes_accessed = (int(x.size) * x.dtype.itemsize + weight_bytes
                      + 2 * b_pad * out_total * 4)
    cost = pl.CostEstimate(flops=flops,
                           transcendentals=b_pad * out_total,
                           bytes_accessed=bytes_accessed)

    # VMEM budget: resident weights (x2 buffering) + double-buffered x / outputs
    # (lane-padded to 128 to be conservative).
    lane = 128
    stream_bytes = 2 * (tile_b * max(d_in, lane) * x.dtype.itemsize
                        + 2 * tile_b * max(out_total, lane) * 4)
    vmem_needed = 2 * weight_bytes + stream_bytes + (2 << 20)
    vmem_limit = int(min(vmem_needed, 100 << 20)) if vmem_needed > (32 << 20) else None

    kernel = _make_kernel(num_hidden)
    act, pre = pl.pallas_call(
        kernel,
        out_shape=(jax.ShapeDtypeStruct((b_pad, out_total), jnp.float32),
                   jax.ShapeDtypeStruct((b_pad, out_total), jnp.float32)),
        grid_spec=pltpu.PrefetchScalarGridSpec(
            num_scalar_prefetch=0,
            grid=(b_pad // tile_b,),
            in_specs=in_specs,
            out_specs=out_specs),
        compiler_params=pltpu.CompilerParams(
            dimension_semantics=("parallel",),
            vmem_limit_bytes=vmem_limit),
        cost_estimate=cost,
    )(x, *packed)

    if b_pad != B:
        act, pre = act[:B], pre[:B]
    return act, pre


# ----------------------------------------------------------------------------
# Pure-JAX reference (mirrors the PyTorch forward)
# ----------------------------------------------------------------------------
def reference_forward(points, nets):
    pres = []
    for net in nets:
        h = points
        for (W, b) in net["hidden"]:
            h = jnp.maximum(h @ W.T + b, 0.0)
        pres.append(h @ net["last"].T)
    pre = jnp.concatenate(pres, axis=1)
    return jnp.tanh(pre), pre


if __name__ == "__main__":
    key = jax.random.PRNGKey(0)
    k_pts, k_par = jax.random.split(key)

    B, in_dims = 512, 3                 # points (xyz), Identity embedding
    hidden_dims = (64, 64)
    head_dims = (3, 1, 1)               # b_nn, r_nn, m_nn -> out_dims == 5

    points = jax.random.normal(k_pts, (B, in_dims), dtype=jnp.float32)
    nets = init_separated_brdf_params(k_par, in_dims, hidden_dims, head_dims)

    # f32-operand path: exact check against the JAX reference (grid of 2 tiles).
    packed_f32 = pack_params_fused(nets, head_dims, compute_dtype=jnp.float32)
    act, pre = separated_brdf_mlp_forward(points, packed_f32,
                                          num_hidden=len(hidden_dims),
                                          tile_b=256)
    jax.block_until_ready((act, pre))

    ref_act, ref_pre = reference_forward(points, nets)
    np.testing.assert_allclose(np.asarray(pre), np.asarray(ref_pre),
                               rtol=1e-4, atol=1e-6)
    np.testing.assert_allclose(np.asarray(act), np.asarray(ref_act),
                               rtol=1e-4, atol=1e-6)

    # bf16-operand path (v6e/v7x MXU throughput, f32 accumulate): loose check.
    packed_bf16 = pack_params_fused(nets, head_dims, compute_dtype=jnp.bfloat16)
    act16, pre16 = separated_brdf_mlp_forward(points, packed_bf16,
                                              num_hidden=len(hidden_dims),
                                              tile_b=256)
    jax.block_until_ready((act16, pre16))
    np.testing.assert_allclose(np.asarray(pre16), np.asarray(ref_pre),
                               rtol=1e-1, atol=2e-6)

    print("KERNEL_OK")
</pallas_src>

<mosaic_0001>
module attributes {stable_mosaic.version = 11 : i64} {
  func.func @kernel(%arg0: i32, %arg1: memref<256x3xf32, #tpu.memory_space<vmem>>, %arg2: memref<3x192xf32, #tpu.memory_space<vmem>>, %arg3: memref<1x192xf32, #tpu.memory_space<vmem>>, %arg4: memref<192x192xf32, #tpu.memory_space<vmem>>, %arg5: memref<1x192xf32, #tpu.memory_space<vmem>>, %arg6: memref<192x5xf32, #tpu.memory_space<vmem>>, %arg7: memref<256x5xf32, #tpu.memory_space<vmem>>, %arg8: memref<256x5xf32, #tpu.memory_space<vmem>>) attributes {dimension_semantics = [#tpu.dimension_semantics<parallel>], iteration_bounds = array<i64: 2>, scalar_prefetch = 0 : i64, scratch_operands = 0 : i64, tpu.core_type = #tpu.core_type<tc>, window_params = [{transform_indices = @transform_0, window_bounds = array<i64: 256, 3>}, {pipeline_mode = #tpu.pipeline_mode<synchronous>, transform_indices = @transform_1, window_bounds = array<i64: 3, 192>}, {pipeline_mode = #tpu.pipeline_mode<synchronous>, transform_indices = @transform_2, window_bounds = array<i64: 1, 192>}, {pipeline_mode = #tpu.pipeline_mode<synchronous>, transform_indices = @transform_3, window_bounds = array<i64: 192, 192>}, {pipeline_mode = #tpu.pipeline_mode<synchronous>, transform_indices = @transform_4, window_bounds = array<i64: 1, 192>}, {pipeline_mode = #tpu.pipeline_mode<synchronous>, transform_indices = @transform_5, window_bounds = array<i64: 192, 5>}, {transform_indices = @transform_6, window_bounds = array<i64: 256, 5>}, {transform_indices = @transform_7, window_bounds = array<i64: 256, 5>}]} {
    %c0 = arith.constant 0 : index
    %c0_0 = arith.constant 0 : index
    %0 = vector.load %arg1[%c0, %c0_0] : memref<256x3xf32, #tpu.memory_space<vmem>>, vector<256x3xf32>
    %c0_1 = arith.constant 0 : index
    %c0_2 = arith.constant 0 : index
    %1 = vector.load %arg2[%c0_1, %c0_2] : memref<3x192xf32, #tpu.memory_space<vmem>>, vector<3x192xf32>
    %c0_3 = arith.constant 0 : index
    %c0_4 = arith.constant 0 : index
    %2 = vector.load %arg3[%c0_3, %c0_4] : memref<1x192xf32, #tpu.memory_space<vmem>>, vector<1x192xf32>
    %cst = arith.constant dense<0.000000e+00> : vector<256x192xf32>
    %3 = tpu.matmul %0, %1, %cst {dimension_numbers = #tpu.dot_dimension_numbers<[1], [0], [0], [1], [0, 0, 1, 1], [], []>} : vector<256x3xf32>, vector<3x192xf32>, vector<256x192xf32> -> vector<256x192xf32>
    %4 = vector.broadcast %2 : vector<1x192xf32> to vector<256x192xf32>
    %5 = arith.addf %3, %4 : vector<256x192xf32>
    %cst_5 = arith.constant 0.000000e+00 : f32
    %6 = vector.broadcast %cst_5 : f32 to vector<256x192xf32>
    %7 = arith.maximumf %5, %6 : vector<256x192xf32>
    %c0_6 = arith.constant 0 : index
    %c0_7 = arith.constant 0 : index
    %8 = vector.load %arg4[%c0_6, %c0_7] : memref<192x192xf32, #tpu.memory_space<vmem>>, vector<192x192xf32>
    %c0_8 = arith.constant 0 : index
    %c0_9 = arith.constant 0 : index
    %9 = vector.load %arg5[%c0_8, %c0_9] : memref<1x192xf32, #tpu.memory_space<vmem>>, vector<1x192xf32>
    %cst_10 = arith.constant dense<0.000000e+00> : vector<256x192xf32>
    %10 = tpu.matmul %7, %8, %cst_10 {dimension_numbers = #tpu.dot_dimension_numbers<[1], [0], [0], [1], [0, 0, 1, 1], [], []>} : vector<256x192xf32>, vector<192x192xf32>, vector<256x192xf32> -> vector<256x192xf32>
    %11 = vector.broadcast %9 : vector<1x192xf32> to vector<256x192xf32>
    %12 = arith.addf %10, %11 : vector<256x192xf32>
    %cst_11 = arith.constant 0.000000e+00 : f32
    %13 = vector.broadcast %cst_11 : f32 to vector<256x192xf32>
    %14 = arith.maximumf %12, %13 : vector<256x192xf32>
    %c0_12 = arith.constant 0 : index
    %c0_13 = arith.constant 0 : index
    %15 = vector.load %arg6[%c0_12, %c0_13] : memref<192x5xf32, #tpu.memory_space<vmem>>, vector<192x5xf32>
    %cst_14 = arith.constant dense<0.000000e+00> : vector<256x5xf32>
    %16 = tpu.matmul %14, %15, %cst_14 {dimension_numbers = #tpu.dot_dimension_numbers<[1], [0], [0], [1], [0, 0, 1, 1], [], []>} : vector<256x192xf32>, vector<192x5xf32>, vector<256x5xf32> -> vector<256x5xf32>
    %c0_15 = arith.constant 0 : index
    %c0_16 = arith.constant 0 : index
    %17 = vector.load %arg8[%c0_15, %c0_16] : memref<256x5xf32, #tpu.memory_space<vmem>>, vector<256x5xf32>
    tpu.vector_store %arg8[%c0_15, %c0_16], %16 {strides = array<i32>} : memref<256x5xf32, #tpu.memory_space<vmem>>, vector<256x5xf32>,
    %18 = math.tanh %16 : vector<256x5xf32>
    %c0_17 = arith.constant 0 : index
    %c0_18 = arith.constant 0 : index
    %19 = vector.load %arg7[%c0_17, %c0_18] : memref<256x5xf32, #tpu.memory_space<vmem>>, vector<256x5xf32>
    tpu.vector_store %arg7[%c0_17, %c0_18], %18 {strides = array<i32>} : memref<256x5xf32, #tpu.memory_space<vmem>>, vector<256x5xf32>,
    return
  }
  func.func @transform_0(%arg0: i32) -> (i32, i32) {
    %c0_i32 = arith.constant 0 : i32
    %c0_i32_0 = arith.constant 0 : i32
    return %arg0, %c0_i32 : i32, i32
  }
  func.func @transform_1(%arg0: i32) -> (i32, i32) {
    %c0_i32 = arith.constant 0 : i32
    %c0_i32_0 = arith.constant 0 : i32
    %c0_i32_1 = arith.constant 0 : i32
    return %c0_i32, %c0_i32_0 : i32, i32
  }
  func.func @transform_2(%arg0: i32) -> (i32, i32) {
    %c0_i32 = arith.constant 0 : i32
    %c0_i32_0 = arith.constant 0 : i32
    %c0_i32_1 = arith.constant 0 : i32
    return %c0_i32, %c0_i32_0 : i32, i32
  }
  func.func @transform_3(%arg0: i32) -> (i32, i32) {
    %c0_i32 = arith.constant 0 : i32
    %c0_i32_0 = arith.constant 0 : i32
    %c0_i32_1 = arith.constant 0 : i32
    return %c0_i32, %c0_i32_0 : i32, i32
  }
  func.func @transform_4(%arg0: i32) -> (i32, i32) {
    %c0_i32 = arith.constant 0 : i32
    %c0_i32_0 = arith.constant 0 : i32
    %c0_i32_1 = arith.constant 0 : i32
    return %c0_i32, %c0_i32_0 : i32, i32
  }
  func.func @transform_5(%arg0: i32) -> (i32, i32) {
    %c0_i32 = arith.constant 0 : i32
    %c0_i32_0 = arith.constant 0 : i32
    %c0_i32_1 = arith.constant 0 : i32
    return %c0_i32, %c0_i32_0 : i32, i32
  }
  func.func @transform_6(%arg0: i32) -> (i32, i32) {
    %c0_i32 = arith.constant 0 : i32
    %c0_i32_0 = arith.constant 0 : i32
    return %arg0, %c0_i32 : i32, i32
  }
  func.func @transform_7(%arg0: i32) -> (i32, i32) {
    %c0_i32 = arith.constant 0 : i32
    %c0_i32_0 = arith.constant 0 : i32
    return %arg0, %c0_i32 : i32, i32
  }
}

</mosaic_0001>

<bundles_post_ra>
// kernel: tpu_custom_call.1
= control target key start
LH: loop header
LB: loop body
LE: loop exit
PB: predicated region body
PF: predicated region fallthrough
CT: control target
= control target key end

     0   :  { %s2098_s24 = smov 0   ;;  %s2898_s0 = inlined_call_operand.vmem [shape: f32[512,3], index: 0, kind: input, shape index: {}]   ;;  %s2899_s1 = inlined_call_operand.vmem [shape: f32[3,192], index: 1, kind: input, shape index: {}]   ;;  %s2900_s2 = inlined_call_operand.vmem [shape: f32[1,192], index: 2, kind: input, shape index: {}]   ;;  %s2901_s3 = inlined_call_operand.vmem [shape: f32[192,192], index: 3, kind: input, shape index: {}]   ;;  %s2902_s4 = inlined_call_operand.vmem [shape: f32[1,192], index: 4, kind: input, shape index: {}]   ;;  %s2903_s5 = inlined_call_operand.vmem [shape: f32[192,5], index: 5, kind: input, shape index: {}]   ;;  %s2904_s6 = inlined_call_operand.vmem [shape: f32[512,5], index: 6, kind: output, shape index: {0}]   ;;  %s2905_s7 = inlined_call_operand.vmem [shape: f32[512,5], index: 7, kind: output, shape index: {1}]  }
   0x1 LB: > { %s1776_s25 = sadd.s32 4294967295, %s2054_s24   ;;  %p1780_p0 = scmp.ge.s32.totalorder %s2054_s24, 1  ;;  %s2054_s24 = sphi %s2098_s24, %s18_s24  }
   0x2   : > { %p241_p1 = scmp.lt.s32.totalorder %s2054_s24, 3 }
   0x4   : > { %p242_p2 = pnand %p1780_p0, %p241_p1 }
   0x5   : > { %v328_v0 = vld [vmem:[%s2899_s1] sm:$0x77] (!%p242_p2)  ;;  %vm440_vm0 = vcmask (!%p242_p2), 1042432   ;;  %s1781_s28 = sshll.u32 (!%p242_p2), %s1776_s25, 5  ;;  %v2056_v2 = vmov (!%p242_p2), 0.0   ;;  %v767_v3 = vld [vmem:[%s2901_s3 + $0x8] sm:$0xff] (!%p242_p2) }
   0x6   : > { %245 = sbr.rel (%p242_p2) target bundleno = 801 (0x321), region = 44  ;;  %v342_v1 = vcombine.high (!%p242_p2), %v328_v0, %v328_v0  ;;  %509 = vmatprep.mubr.f32.mxu0 (!%p242_p2), %v2056_v2  ;;  %p279_p3 = scmp.lt.s32.totalorder (!%p242_p2), %s1781_s28, 63  ;;  %605 = vmatprep.mubr.f32.mxu1 (!%p242_p2), %v2056_v2  ;;  %v769_v4 = vld [vmem:[%s2901_s3 + $0x18] sm:$0xff] (!%p242_p2)  ;;  %vm343_vm1 = vcmask (!%p242_p2), 23552   ;;  %v766_v7 = vld [vmem:[%s2901_s3] sm:$0xff] (!%p242_p2)  ;;  %v768_v8 = vld [vmem:[%s2901_s3 + $0x10] sm:$0xff] (!%p242_p2) }
   0x7   : > { %v1887_v5 = vpack.c.bf16 (!%p242_p2), %v769_v4, %v767_v3  ;;  %v771_v9 = vld [vmem:[%s2901_s3 + $0x28] sm:$0xff] (!%p242_p2)  ;;  %v773_v10 = vld [vmem:[%s2901_s3 + $0x38] sm:$0xff] (!%p242_p2)  ;;  %v1889_v12 = vpack.c.bf16 (!%p242_p2), %v768_v8, %v766_v7  ;;  %v770_v14 = vld [vmem:[%s2901_s3 + $0x20] sm:$0xff] (!%p242_p2)  ;;  %vm826_vm2 = vcmask (!%p242_p2), 523264   ;;  %vm1589_vm3 = vcmask (!%p242_p2), 39936  }
   0x8   : > { %1787 = vmatprep.subr.msk.mxu0 (!%p242_p2), %vm440_vm0, %v342_v1  ;;  %1971 = vmatprep.subr.msk.mxu1 (!%p242_p2), %vm440_vm0, %v342_v1  ;;  %v1891_v13 = vpack.c.bf16 (!%p242_p2), %v773_v10, %v771_v9  ;;  %v772_v15 = vld [vmem:[%s2901_s3 + $0x30] sm:$0xff] (!%p242_p2)  ;;  %v775_v17 = vld [vmem:[%s2901_s3 + $0x48] sm:$0xff] (!%p242_p2)  ;;  %v777_v18 = vld [vmem:[%s2901_s3 + $0x58] sm:$0xff] (!%p242_p2) }
   0x9   : > { %1788 = vmatpush1.msk.msra.mxu0 (!%p242_p2), %vm440_vm0, %v328_v0  ;;  %1972 = vmatpush1.msk.msra.mxu1 (!%p242_p2), %vm440_vm0, %v328_v0  ;;  %v1893_v21 = vpack.c.bf16 (!%p242_p2), %v772_v15, %v770_v14  ;;  %v1895_v22 = vpack.c.bf16 (!%p242_p2), %v777_v18, %v775_v17  ;;  %v774_v23 = vld [vmem:[%s2901_s3 + $0x40] sm:$0xff] (!%p242_p2)  ;;  %v776_v24 = vld [vmem:[%s2901_s3 + $0x50] sm:$0xff] (!%p242_p2)  ;;  %v779_v25 = vld [vmem:[%s2901_s3 + $0x68] sm:$0xff] (!%p242_p2) }
   0xa   : > { %1888 = vmatprep.subr.bf16.mxu1 (!%p242_p2), %v1887_v5  ;;  %v781_v26 = vld [vmem:[%s2901_s3 + $0x78] sm:$0xff] (!%p242_p2)  ;;  %v1897_v29 = vpack.c.bf16 (!%p242_p2), %v776_v24, %v774_v23  ;;  %v778_v31 = vld [vmem:[%s2901_s3 + $0x60] sm:$0xff] (!%p242_p2)  ;;  %v780_v32 = vld [vmem:[%s2901_s3 + $0x70] sm:$0xff] (!%p242_p2) }
   0xb   : > { %v1899_v30 = vpack.c.bf16 (!%p242_p2), %v781_v26, %v779_v25  ;;  %v783_v33 = vld [vmem:[%s2901_s3 + $0x88] sm:$0xff] (!%p242_p2)  ;;  %v785_v34 = vld [vmem:[%s2901_s3 + $0x98] sm:$0xff] (!%p242_p2)  ;;  %v1901_v37 = vpack.c.bf16 (!%p242_p2), %v780_v32, %v778_v31  ;;  %v782_v39 = vld [vmem:[%s2901_s3 + $0x80] sm:$0xff] (!%p242_p2) }
   0xc   : > { %v1903_v38 = vpack.c.bf16 (!%p242_p2), %v785_v34, %v783_v33  ;;  %v784_v40 = vld [vmem:[%s2901_s3 + $0x90] sm:$0xff] (!%p242_p2)  ;;  %v787_v41 = vld [vmem:[%s2901_s3 + $0xa8] sm:$0xff] (!%p242_p2)  ;;  %v789_v42 = vld [vmem:[%s2901_s3 + $0xb8] sm:$0xff] (!%p242_p2) }
   0xd   : > { %s2907_s28 = smov (!%p279_p3, %s1781_s28), 63  ;;  %v1905_v45 = vpack.c.bf16 %v784_v40, %v782_v39  ;;  %v1907_v46 = vpack.c.bf16 %v789_v42, %v787_v41  ;;  %v786_v47 = vld [vmem:[%s2901_s3 + $0xa0] sm:$0xff]  ;;  %v788_v48 = vld [vmem:[%s2901_s3 + $0xb0] sm:$0xff]  ;;  %v791_v49 = vld [vmem:[%s2901_s3 + $0xc8] sm:$0xff] }
   0xe   : > { %s2117_s10 = sshll.u32 %s2907_s28, 3  ;;  %v793_v50 = vld [vmem:[%s2901_s3 + $0xd8] sm:$0xff]  ;;  %v1909_v53 = vpack.c.bf16 %v788_v48, %v786_v47  ;;  %v790_v55 = vld [vmem:[%s2901_s3 + $0xc0] sm:$0xff]  ;;  %v792_v56 = vld [vmem:[%s2901_s3 + $0xd0] sm:$0xff] }
   0xf   : > { %s2123_s13 = scalar_lea.vmem %s2898_s0, %s2117_s10  ;;  %v1911_v54 = vpack.c.bf16 %v793_v50, %v791_v49  ;;  %v795_v57 = vld [vmem:[%s2901_s3 + $0xe8] sm:$0xff]  ;;  %v797_v58 = vld [vmem:[%s2901_s3 + $0xf8] sm:$0xff]  ;;  %v1913_v61 = vpack.c.bf16 %v792_v56, %v790_v55  ;;  %v794_v63 = vld [vmem:[%s2901_s3 + $0xe0] sm:$0xff]  ;;  %s2759_s17 = scalar_lea.vmem %s2905_s7, %s2117_s10 }
  0x10   : > { %v296_v6 = vld [vmem:[%s2123_s13] sm:$0xff]  ;;  %v297_v11 = vld [vmem:[%s2123_s13 + $0x8] sm:$0xff]  ;;  %v298_v19 = vld [vmem:[%s2123_s13 + $0x10] sm:$0xff]  ;;  %v1915_v62 = vpack.c.bf16 %v797_v58, %v795_v57  ;;  %s2769_s20 = scalar_lea.vmem %s2904_s6, %s2117_s10 }
  0x11   : > { %1789 = vmatmul.mubr.msk.f32.vlgmr.msra.gmra.mrb[0].mxu0 %vm343_vm1, %v296_v6  ;;  %v312_v16 = vld [vmem:[%s2123_s13 + $0x80] sm:$0xff]  ;;  %v313_v20 = vld [vmem:[%s2123_s13 + $0x88] sm:$0xff]  ;;  %v299_v27 = vld [vmem:[%s2123_s13 + $0x18] sm:$0xff] }
  0x12   : > { %515 = vmatprep.mubr.f32.mxu0 %v2056_v2  ;;  %1805 = vmatmul.mubr.msk.f32.vlgmr.msra.gmra.mrb[0].mxu1 %vm343_vm1, %v312_v16  ;;  %v314_v28 = vld [vmem:[%s2123_s13 + $0x90] sm:$0xff]  ;;  %v300_v35 = vld [vmem:[%s2123_s13 + $0x20] sm:$0xff]  ;;  %v315_v36 = vld [vmem:[%s2123_s13 + $0x98] sm:$0xff] }
  0x13   : > { %611 = vmatprep.mubr.f32.mxu1 %v2056_v2  ;;  %1890 = vmatpush1.bf16.msra.mxu1 %v1889_v12  ;;  %v301_v43 = vld [vmem:[%s2123_s13 + $0x28] sm:$0xff]  ;;  %v316_v44 = vld [vmem:[%s2123_s13 + $0xa0] sm:$0xff]  ;;  %v302_v51 = vld [vmem:[%s2123_s13 + $0x30] sm:$0xff] }
  0x14   : > { %1892 = vmatprep.subr.bf16.mxu1 %v1891_v13  ;;  %v317_v52 = vld [vmem:[%s2123_s13 + $0xa8] sm:$0xff]  ;;  %v303_v59 = vld [vmem:[%s2123_s13 + $0x38] sm:$0xff]  ;;  %v318_v60 = vld [vmem:[%s2123_s13 + $0xb0] sm:$0xff] }
  0x15   : > { %1790 = vmatmul.mubr.msk.f32.gmra.mrb[2].mxu0 %vm343_vm1, %v297_v11  ;;  %v796_v0 = vld [vmem:[%s2901_s3 + $0xf0] sm:$0xff]  ;;  %v799_v1 = vld [vmem:[%s2901_s3 + $0x108] sm:$0xff]  ;;  %v801_v3 = vld [vmem:[%s2901_s3 + $0x118] sm:$0xff] }
  0x16   : > { %521 = vmatprep.mubr.f32.mxu0 %v2056_v2  ;;  %1806 = vmatmul.mubr.msk.f32.gmra.mrb[2].mxu1 %vm343_vm1, %v313_v20  ;;  %v304_v4 = vld [vmem:[%s2123_s13 + $0x40] sm:$0xff]  ;;  %v319_v5 = vld [vmem:[%s2123_s13 + $0xb8] sm:$0xff]  ;;  %v1917_v6 = vpack.c.bf16 %v796_v0, %v794_v63  ;;  %v1919_v7 = vpack.c.bf16 %v801_v3, %v799_v1  ;;  %v800_v9 = vld [vmem:[%s2901_s3 + $0x110] sm:$0xff] }
  0x17   : > { %617 = vmatprep.mubr.f32.mxu1 %v2056_v2  ;;  %1894 = vmatpush1.bf16.msra.mxu1 %v1893_v21  ;;  %v798_v8 = vld [vmem:[%s2901_s3 + $0x100] sm:$0xff]  ;;  %v803_v10 = vld [vmem:[%s2901_s3 + $0x128] sm:$0xff]  ;;  %v805_v11 = vld [vmem:[%s2901_s3 + $0x138] sm:$0xff] }
  0x18   : > { %1896 = vmatprep.subr.bf16.mxu1 %v1895_v22  ;;  %v305_v12 = vld [vmem:[%s2123_s13 + $0x48] sm:$0xff]  ;;  %v320_v13 = vld [vmem:[%s2123_s13 + $0xc0] sm:$0xff]  ;;  %v1921_v14 = vpack.c.bf16 %v800_v9, %v798_v8  ;;  %v1923_v15 = vpack.c.bf16 %v805_v11, %v803_v10  ;;  %v804_v17 = vld [vmem:[%s2901_s3 + $0x130] sm:$0xff] }
  0x19   : > { %1791 = vmatmul.mubr.msk.f32.gmra.mrb[4].mxu0 %vm343_vm1, %v298_v19  ;;  %v802_v16 = vld [vmem:[%s2901_s3 + $0x120] sm:$0xff]  ;;  %v807_v18 = vld [vmem:[%s2901_s3 + $0x148] sm:$0xff]  ;;  %v809_v19 = vld [vmem:[%s2901_s3 + $0x158] sm:$0xff] }
  0x1a   : > { %527 = vmatprep.mubr.f32.mxu0 %v2056_v2  ;;  %1807 = vmatmul.mubr.msk.f32.gmra.mrb[4].mxu1 %vm343_vm1, %v314_v28  ;;  %v306_v20 = vld [vmem:[%s2123_s13 + $0x50] sm:$0xff]  ;;  %v321_v21 = vld [vmem:[%s2123_s13 + $0xc8] sm:$0xff]  ;;  %v1925_v22 = vpack.c.bf16 %v804_v17, %v802_v16  ;;  %v1927_v23 = vpack.c.bf16 %v809_v19, %v807_v18  ;;  %v806_v24 = vld [vmem:[%s2901_s3 + $0x140] sm:$0xff] }
  0x1b   : > { %623 = vmatprep.mubr.f32.mxu1 %v2056_v2  ;;  %1898 = vmatpush1.bf16.msra.mxu1 %v1897_v29  ;;  %v808_v25 = vld [vmem:[%s2901_s3 + $0x150] sm:$0xff]  ;;  %v307_v26 = vld [vmem:[%s2123_s13 + $0x58] sm:$0xff]  ;;  %v308_v29 = vld [vmem:[%s2123_s13 + $0x60] sm:$0xff] }
  0x1c   : > { %1900 = vmatprep.subr.bf16.mxu1 %v1899_v30  ;;  %v1929_v28 = vpack.c.bf16 %v808_v25, %v806_v24  ;;  %v323_v30 = vld [vmem:[%s2123_s13 + $0xd8] sm:$0xff]  ;;  %v309_v31 = vld [vmem:[%s2123_s13 + $0x68] sm:$0xff]  ;;  %v324_v32 = vld [vmem:[%s2123_s13 + $0xe0] sm:$0xff] }
  0x1d   : > { %1792 = vmatmul.mubr.msk.f32.gmra.mrb[6].mxu0 %vm343_vm1, %v299_v27  ;;  %v322_v27 = vld [vmem:[%s2123_s13 + $0xd0] sm:$0xff]  ;;  %v325_v34 = vld [vmem:[%s2123_s13 + $0xe8] sm:$0xff]  ;;  %v813_v39 = vld [vmem:[%s2901_s3 + $0x178] sm:$0xff] }
  0x1e   : > { %533 = vmatprep.mubr.f32.mxu0 %v2056_v2  ;;  %1808 = vmatmul.mubr.msk.f32.gmra.mrb[6].mxu1 %vm343_vm1, %v315_v36  ;;  %v310_v33 = vld [vmem:[%s2123_s13 + $0x70] sm:$0xff]  ;;  %v810_v41 = vld [vmem:[%s2901_s3 + $0x160] sm:$0xff]  ;;  %v1245_v55 = vld [vmem:[%s2903_s5 + $0x8] sm:$0xff] }
  0x1f   : > { %629 = vmatprep.mubr.f32.mxu1 %v2056_v2  ;;  %1902 = vmatpush1.bf16.msra.mxu1 %v1901_v37  ;;  %v326_v36 = vld [vmem:[%s2123_s13 + $0xf0] sm:$0xff]  ;;  %v327_v37 = vld [vmem:[%s2123_s13 + $0xf8] sm:$0xff] }
  0x20   : > { %1904 = vmatprep.subr.bf16.mxu1 %v1903_v38  ;;  %v811_v38 = vld [vmem:[%s2901_s3 + $0x168] sm:$0xff]  ;;  %v1246_v56 = vld [vmem:[%s2903_s5 + $0x10] sm:$0xff]  ;;  %v1251_v18 = vld [vmem:[%s2903_s5 + $0x38] sm:$0xff] }
  0x21   : > { %1793 = vmatmul.mubr.msk.f32.gmra.mrb[8].mxu0 %vm343_vm1, %v300_v35  ;;  %v311_v35 = vld [vmem:[%s2123_s13 + $0x78] sm:$0xff]  ;;  %v1931_v40 = vpack.c.bf16 %v813_v39, %v811_v38  ;;  %v1250_v17 = vld [vmem:[%s2903_s5 + $0x30] sm:$0xff] }
  0x22   : > { %539 = vmatprep.mubr.f32.mxu0 %v2056_v2  ;;  %1809 = vmatmul.mubr.msk.f32.gmra.mrb[8].mxu1 %vm343_vm1, %v316_v44  ;;  %v1254_v39 = vld [vmem:[%s2903_s5 + $0x50] sm:$0xff] }
  0x23   : > { %635 = vmatprep.mubr.f32.mxu1 %v2056_v2  ;;  %1906 = vmatpush1.bf16.msra.mxu1 %v1905_v45 }
  0x24   : > { %1908 = vmatprep.subr.bf16.mxu1 %v1907_v46  ;;  %v329_v46 = vld [vmem:[%s2900_s2] sm:$0x3] }
  0x25   : > { %1794 = vmatmul.mubr.msk.f32.gmra.mrb[10].mxu0 %vm343_vm1, %v301_v43  ;;  %v331_v43 = vlaneseq }
  0x26   : > { %545 = vmatprep.mubr.f32.mxu0 %v2056_v2  ;;  %1810 = vmatmul.mubr.msk.f32.gmra.mrb[10].mxu1 %vm343_vm1, %v317_v52 }
  0x27   : > { %641 = vmatprep.mubr.f32.mxu1 %v2056_v2  ;;  %1910 = vmatpush1.bf16.msra.mxu1 %v1909_v53  ;;  %v2357_v44 = vshrl.u32 %v331_v43, 7 }
  0x28   : > { %1912 = vmatprep.subr.bf16.mxu1 %v1911_v54  ;;  %v1244_v54 = vld [vmem:[%s2903_s5] sm:$0xff] }
  0x29   : > { %1795 = vmatmul.mubr.msk.f32.gmra.mrb[12].mxu0 %vm343_vm1, %v302_v51  ;;  %v333_v45 = vsub.s32 0, %v2357_v44  ;;  %v337_v47 = vsub.s32 1, %v2357_v44 }
  0x2a   : > { %551 = vmatprep.mubr.f32.mxu0 %v2056_v2  ;;  %1811 = vmatmul.mubr.msk.f32.gmra.mrb[12].mxu1 %vm343_vm1, %v318_v60  ;;  %v1936_v60 = vpack.c.bf16 %v1245_v55, %v1244_v54  ;;  %v1256_v54 = vld [vmem:[%s2903_s5 + $0x60] sm:$0xff]  ;;  %v1257_v55 = vld [vmem:[%s2903_s5 + $0x68] sm:$0xff] }
  0x2b   : > { %647 = vmatprep.mubr.f32.mxu1 %v2056_v2  ;;  %1914 = vmatpush1.bf16.msra.mxu1 %v1913_v61  ;;  %v2366_v48 = vrot.slane %v329_v46, %v333_v45  ;;  %v2370_v49 = vrot.slane %v329_v46, %v337_v47  ;;  %v1247_v61 = vld [vmem:[%s2903_s5 + $0x18] sm:$0xff] }
  0x2c   : > { %1916 = vmatprep.subr.bf16.mxu1 %v1915_v62 }
  0x2d   : > { %1796 = vmatmul.mubr.msk.f32.gmra.mrb[14].mxu0 %vm343_vm1, %v303_v59  ;;  %v2057_v59 = vmov 0.0|0.0  }
  0x2e   : > { %557 = vmatprep.mubr.f32.mxu0 %v2056_v2  ;;  %1812 = vmatmul.mubr.msk.f32.gmra.mrb[14].mxu1 %vm343_vm1, %v319_v5  ;;  %v1939_v5 = vpack.c.bf16 %v1247_v61, %v1246_v56 }
  0x2f   : > { %653 = vmatprep.mubr.f32.mxu1 %v2056_v2  ;;  %1918 = vmatpush1.bf16.msra.mxu1 %v1917_v6  ;;  %v1248_v6 = vld [vmem:[%s2903_s5 + $0x20] sm:$0xff] }
  0x30   : > { %1920 = vmatprep.subr.bf16.mxu1 %v1919_v7  ;;  %1935 = vmatprep.subr.bf16.mxu0 %v2057_v59  ;;  %v1249_v7 = vld [vmem:[%s2903_s5 + $0x28] sm:$0xff] }
  0x31   : > { %1797 = vmatmul.mubr.msk.f32.gmra.mrb[16].mxu0 %vm343_vm1, %v304_v4  ;;  %v1942_v16 = vpack.c.bf16 %v1249_v7, %v1248_v6  ;;  %v1259_v6 = vld [vmem:[%s2903_s5 + $0x78] sm:$0xff] }
  0x32   : > { %563 = vmatprep.mubr.f32.mxu0 %v2056_v2  ;;  %1813 = vmatmul.mubr.msk.f32.gmra.mrb[16].mxu1 %vm343_vm1, %v320_v13 }
  0x33   : > { %659 = vmatprep.mubr.f32.mxu1 %v2056_v2  ;;  %1922 = vmatpush1.bf16.msra.mxu1 %v1921_v14 }
  0x34   : > { %1924 = vmatprep.subr.bf16.mxu1 %v1923_v15  ;;  %1937 = vmatpush1.bf16.msra.mxu0 %v1936_v60 }
  0x35   : > { %1798 = vmatmul.mubr.msk.f32.gmra.mrb[18].mxu0 %vm343_vm1, %v305_v12  ;;  %1938 = vmatprep.subr.bf16.mxu0 %v2057_v59 }
  0x36   : > { %569 = vmatprep.mubr.f32.mxu0 %v2056_v2  ;;  %1814 = vmatmul.mubr.msk.f32.gmra.mrb[18].mxu1 %vm343_vm1, %v321_v21 }
  0x37   : > { %665 = vmatprep.mubr.f32.mxu1 %v2056_v2  ;;  %1926 = vmatpush1.bf16.msra.mxu1 %v1925_v22 }
  0x38   : > { %1928 = vmatprep.subr.bf16.mxu1 %v1927_v23  ;;  %1940 = vmatpush1.bf16.msra.mxu0 %v1939_v5  ;;  %v1258_v5 = vld [vmem:[%s2903_s5 + $0x70] sm:$0xff] }
  0x39   : > { %1799 = vmatmul.mubr.msk.f32.gmra.mrb[20].mxu0 %vm343_vm1, %v306_v20  ;;  %1941 = vmatprep.subr.bf16.mxu0 %v2057_v59 }
  0x3a   : > { %575 = vmatprep.mubr.f32.mxu0 %v2056_v2  ;;  %1815 = vmatmul.mubr.msk.f32.gmra.mrb[20].mxu1 %vm343_vm1, %v322_v27  ;;  %v1945_v27 = vpack.c.bf16 %v1251_v18, %v1250_v17  ;;  %v1957_v17 = vpack.c.bf16 %v1259_v6, %v1258_v5  ;;  %v1260_v18 = vld [vmem:[%s2903_s5 + $0x80] sm:$0xff] }
  0x3b   : > { %671 = vmatprep.mubr.f32.mxu1 %v2056_v2  ;;  %1930 = vmatpush1.bf16.msra.mxu1 %v1929_v28  ;;  %v1252_v28 = vld [vmem:[%s2903_s5 + $0x40] sm:$0xff] }
  0x3c   : > { %1932 = vmatprep.subr.bf16.mxu1 %v1931_v40  ;;  %1943 = vmatpush1.bf16.msra.mxu0 %v1942_v16  ;;  %v1255_v40 = vld [vmem:[%s2903_s5 + $0x58] sm:$0xff] }
  0x3d   : > { %1800 = vmatmul.mubr.msk.f32.gmra.mrb[22].mxu0 %vm343_vm1, %v307_v26  ;;  %1944 = vmatprep.subr.bf16.mxu0 %v2057_v59 }
  0x3e   : > { %581 = vmatprep.mubr.f32.mxu0 %v2056_v2  ;;  %1816 = vmatmul.mubr.msk.f32.gmra.mrb[22].mxu1 %vm343_vm1, %v323_v30 }
  0x3f   : > { %677 = vmatprep.mubr.f32.mxu1 %v2056_v2 }
  0x40   : > { %1946 = vmatpush1.bf16.msra.mxu0 %v1945_v27 }
  0x41   : > { %1801 = vmatmul.mubr.msk.f32.gmra.mrb[24].mxu0 %vm343_vm1, %v308_v29  ;;  %v1253_v29 = vld [vmem:[%s2903_s5 + $0x48] sm:$0xff]  ;;  %1947 = vmatprep.subr.bf16.mxu0 %v2057_v59 }
  0x42   : > { %587 = vmatprep.mubr.f32.mxu0 %v2056_v2  ;;  %1817 = vmatmul.mubr.msk.f32.gmra.mrb[24].mxu1 %vm343_vm1, %v324_v32  ;;  %v1948_v38 = vpack.c.bf16 %v1253_v29, %v1252_v28 }
  0x43   : > { %683 = vmatprep.mubr.f32.mxu1 %v2056_v2 }
  0x44   : > { %1949 = vmatpush1.bf16.msra.mxu0 %v1948_v38 }
  0x45   : > { %1802 = vmatmul.mubr.msk.f32.gmra.mrb[26].mxu0 %vm343_vm1, %v309_v31  ;;  %1950 = vmatprep.subr.bf16.mxu0 %v2057_v59 }
  0x46   : > { %593 = vmatprep.mubr.f32.mxu0 %v2056_v2  ;;  %1818 = vmatmul.mubr.msk.f32.gmra.mrb[26].mxu1 %vm343_vm1, %v325_v34 }
  0x47   : > { %689 = vmatprep.mubr.f32.mxu1 %v2056_v2 }
  0x49   : > { %1803 = vmatmul.mubr.msk.f32.gmra.mrb[28].mxu0 %vm343_vm1, %v310_v33 }
  0x4a   : > { %599 = vmatprep.mubr.f32.mxu0 %v2056_v2  ;;  %1819 = vmatmul.mubr.msk.f32.gmra.mrb[28].mxu1 %vm343_vm1, %v326_v36 }
  0x4b   : > { %695 = vmatprep.mubr.f32.mxu1 %v2056_v2  ;;  %v812_v2 = vld [vmem:[%s2901_s3 + $0x170] sm:$0xff] }
  0x4c   : > { %v1933_v42 = vpack.c.bf16 %v812_v2, %v810_v41 }
  0x4d   : > { %1804 = vmatmul.mubr.msk.f32.gmra.mrb[30].mxu0 %vm343_vm1, %v311_v35 }
  0x4e   : > { %1820 = vmatmul.mubr.msk.f32.gmra.mrb[30].mxu1 %vm343_vm1, %v327_v37 }
  0x4f   : > { %1934 = vmatpush1.bf16.msra.mxu1 %v1933_v42 }
  0xe4   : > { %v511_v50 = vpop.f32.mrb[0].mxu0 }
  0xe5   : > { %v512_v51 = vadd.f32 %v511_v50, %v2366_v48  ;;  %v513_v52 = vpop.f32.mrb[1].mxu0  ;;  %v2388_v1 = vpop.f32.mrb[0].mxu1 }
  0xe6   : > { %v514_v53 = vadd.f32 %v513_v52, %v2370_v49  ;;  %v2392_v4 = vpop.f32.mrb[1].mxu1 }
  0xe7   : > { %v702_v62 = vmax.f32 %v512_v51, 0.0 }
  0xe8   : > { %v703_v57 = vmax.f32 %v514_v53, 0.0  ;;  %v517_v58 = vpop.f32.mrb[2].mxu0  ;;  %v1951_v53 = vpack.c.bf16 %v1255_v40, %v1254_v39 }
  0xe9   : > { %v518_v63 = vadd.f32 %v517_v58, %v2366_v48  ;;  %v519_v0 = vpop.f32.mrb[3].mxu0  ;;  %v2402_v13 = vpop.f32.mrb[2].mxu1 }
  0xea   : > { %v520_v3 = vadd.f32 %v519_v0, %v2370_v49  ;;  %1821 = vmatprep.mubr.msk.f32.mxu1 %vm826_vm2, %v703_v57  ;;  %v2406_v15 = vpop.f32.mrb[3].mxu1  ;;  %1952 = vmatpush1.bf16.msra.mxu0 %v1951_v53 }
  0xeb   : > { %988 = vmatmul.mubr.f32.vlgmr.msra.gmra.mrb[32].mxu1 %v702_v62  ;;  %v704_v10 = vmax.f32 %v518_v63, 0.0  ;;  %1953 = vmatprep.subr.bf16.mxu0 %v2057_v59 }
  0xec   : > { %v705_v8 = vmax.f32 %v520_v3, 0.0  ;;  %v523_v9 = vpop.f32.mrb[4].mxu0  ;;  %v1954_v3 = vpack.c.bf16 %v1257_v55, %v1256_v54 }
  0xed   : > { %v524_v11 = vadd.f32 %v523_v9, %v2366_v48  ;;  %v525_v12 = vpop.f32.mrb[5].mxu0  ;;  %v2416_v24 = vpop.f32.mrb[4].mxu1 }
  0xee   : > { %v526_v14 = vadd.f32 %v525_v12, %v2370_v49  ;;  %1822 = vmatprep.mubr.msk.f32.mxu1 %vm826_vm2, %v705_v8  ;;  %v2420_v26 = vpop.f32.mrb[5].mxu1  ;;  %1955 = vmatpush1.bf16.msra.mxu0 %v1954_v3 }
  0xef   : > { %994 = vmatmul.mubr.f32.gmra.mrb[34].mxu1 %v704_v10  ;;  %v706_v21 = vmax.f32 %v524_v11, 0.0  ;;  %1956 = vmatprep.subr.bf16.mxu0 %v2057_v59 }
  0xf0   : > { %v707_v19 = vmax.f32 %v526_v14, 0.0  ;;  %v529_v20 = vpop.f32.mrb[6].mxu0 }
  0xf1   : > { %v530_v22 = vadd.f32 %v529_v20, %v2366_v48  ;;  %v531_v23 = vpop.f32.mrb[7].mxu0  ;;  %v2430_v35 = vpop.f32.mrb[6].mxu1 }
  0xf2   : > { %v532_v25 = vadd.f32 %v531_v23, %v2370_v49  ;;  %1823 = vmatprep.mubr.msk.f32.mxu1 %vm826_vm2, %v707_v19  ;;  %v2434_v37 = vpop.f32.mrb[7].mxu1  ;;  %v1261_v19 = vld [vmem:[%s2903_s5 + $0x88] sm:$0xff]  ;;  %1958 = vmatpush1.bf16.msra.mxu0 %v1957_v17 }
  0xf3   : > { %1000 = vmatmul.mubr.f32.gmra.mrb[36].mxu1 %v706_v21  ;;  %v708_v32 = vmax.f32 %v530_v22, 0.0  ;;  %1959 = vmatprep.subr.bf16.mxu0 %v2057_v59 }
  0xf4   : > { %v709_v30 = vmax.f32 %v532_v25, 0.0  ;;  %v535_v31 = vpop.f32.mrb[8].mxu0 }
  0xf5   : > { %v536_v33 = vadd.f32 %v535_v31, %v2366_v48  ;;  %v537_v34 = vpop.f32.mrb[9].mxu0  ;;  %v2444_v50 = vpop.f32.mrb[8].mxu1  ;;  %v1262_v31 = vld [vmem:[%s2903_s5 + $0x90] sm:$0xff] }
  0xf6   : > { %v538_v36 = vadd.f32 %v537_v34, %v2370_v49  ;;  %1824 = vmatprep.mubr.msk.f32.mxu1 %vm826_vm2, %v709_v30  ;;  %v2448_v52 = vpop.f32.mrb[9].mxu1  ;;  %v1960_v30 = vpack.c.bf16 %v1261_v19, %v1260_v18 }
  0xf7   : > { %1006 = vmatmul.mubr.f32.gmra.mrb[38].mxu1 %v708_v32  ;;  %v710_v42 = vmax.f32 %v536_v33, 0.0  ;;  %v1263_v32 = vld [vmem:[%s2903_s5 + $0x98] sm:$0xff] }
  0xf8   : > { %v711_v41 = vmax.f32 %v538_v36, 0.0  ;;  %v541_v2 = vpop.f32.mrb[10].mxu0  ;;  %1961 = vmatpush1.bf16.msra.mxu0 %v1960_v30 }
  0xf9   : > { %v542_v43 = vadd.f32 %v541_v2, %v2366_v48  ;;  %v543_v46 = vpop.f32.mrb[11].mxu0  ;;  %v2458_v62 = vpop.f32.mrb[10].mxu1  ;;  %1962 = vmatprep.subr.bf16.mxu0 %v2057_v59 }
  0xfa   : > { %v544_v51 = vadd.f32 %v543_v46, %v2370_v49  ;;  %1825 = vmatprep.mubr.msk.f32.mxu1 %vm826_vm2, %v711_v41  ;;  %v2462_v0 = vpop.f32.mrb[11].mxu1  ;;  %v1265_v46 = vld [vmem:[%s2903_s5 + $0xa8] sm:$0xff] }
  0xfb   : > { %1012 = vmatmul.mubr.f32.gmra.mrb[40].mxu1 %v710_v42  ;;  %v712_v58 = vmax.f32 %v542_v43, 0.0  ;;  %v1963_v42 = vpack.c.bf16 %v1263_v32, %v1262_v31  ;;  %v1264_v43 = vld [vmem:[%s2903_s5 + $0xa0] sm:$0xff] }
  0xfc   : > { %v713_v56 = vmax.f32 %v544_v51, 0.0  ;;  %v547_v57 = vpop.f32.mrb[12].mxu0 }
  0xfd   : > { %v548_v60 = vadd.f32 %v547_v57, %v2366_v48  ;;  %v549_v61 = vpop.f32.mrb[13].mxu0  ;;  %v2472_v12 = vpop.f32.mrb[12].mxu1  ;;  %1964 = vmatpush1.bf16.msra.mxu0 %v1963_v42 }
  0xfe   : > { %v550_v63 = vadd.f32 %v549_v61, %v2370_v49  ;;  %1826 = vmatprep.mubr.msk.f32.mxu1 %vm826_vm2, %v713_v56  ;;  %v2476_v16 = vpop.f32.mrb[13].mxu1  ;;  %v1966_v61 = vpack.c.bf16 %v1265_v46, %v1264_v43  ;;  %1965 = vmatprep.subr.bf16.mxu0 %v2057_v59 }
  0xff   : > { %1018 = vmatmul.mubr.f32.gmra.mrb[42].mxu1 %v712_v58  ;;  %v714_v9 = vmax.f32 %v548_v60, 0.0 }
 0x100   : > { %v715_v7 = vmax.f32 %v550_v63, 0.0  ;;  %v553_v8 = vpop.f32.mrb[14].mxu0 }
 0x101   : > { %v554_v10 = vadd.f32 %v553_v8, %v2366_v48  ;;  %v555_v11 = vpop.f32.mrb[15].mxu0  ;;  %v2486_v27 = vpop.f32.mrb[14].mxu1  ;;  %1967 = vmatpush1.bf16.msra.mxu0 %v1966_v61 }
 0x102   : > { %v556_v14 = vadd.f32 %v555_v11, %v2370_v49  ;;  %1827 = vmatprep.mubr.msk.f32.mxu1 %vm826_vm2, %v715_v7  ;;  %v2490_v29 = vpop.f32.mrb[15].mxu1  ;;  %1968 = vmatprep.subr.bf16.mxu0 %v2057_v59 }
 0x103   : > { %1024 = vmatmul.mubr.f32.gmra.mrb[44].mxu1 %v714_v9  ;;  %v716_v22 = vmax.f32 %v554_v10, 0.0 }
 0x104   : > { %v717_v20 = vmax.f32 %v556_v14, 0.0  ;;  %v559_v21 = vpop.f32.mrb[16].mxu0 }
 0x105   : > { %v560_v23 = vadd.f32 %v559_v21, %v2366_v48  ;;  %v561_v25 = vpop.f32.mrb[17].mxu0  ;;  %v2500_v40 = vpop.f32.mrb[16].mxu1 }
 0x106   : > { %v562_v28 = vadd.f32 %v561_v25, %v2370_v49  ;;  %1828 = vmatprep.mubr.msk.f32.mxu1 %vm826_vm2, %v717_v20  ;;  %v2504_v2 = vpop.f32.mrb[17].mxu1 }
 0x107   : > { %1030 = vmatmul.mubr.f32.gmra.mrb[46].mxu1 %v716_v22  ;;  %v718_v36 = vmax.f32 %v560_v23, 0.0 }
 0x108   : > { %v719_v33 = vmax.f32 %v562_v28, 0.0  ;;  %v565_v34 = vpop.f32.mrb[18].mxu0 }
 0x109   : > { %v566_v38 = vadd.f32 %v565_v34, %v2366_v48  ;;  %v567_v39 = vpop.f32.mrb[19].mxu0  ;;  %v2514_v57 = vpop.f32.mrb[18].mxu1 }
 0x10a   : > { %v568_v41 = vadd.f32 %v567_v39, %v2370_v49  ;;  %1829 = vmatprep.mubr.msk.f32.mxu1 %vm826_vm2, %v719_v33  ;;  %v2518_v60 = vpop.f32.mrb[19].mxu1 }
 0x10b   : > { %1036 = vmatmul.mubr.f32.gmra.mrb[48].mxu1 %v718_v36  ;;  %v720_v54 = vmax.f32 %v566_v38, 0.0 }
 0x10c   : > { %v721_v51 = vmax.f32 %v568_v41, 0.0  ;;  %v571_v53 = vpop.f32.mrb[20].mxu0 }
 0x10d   : > { %v572_v55 = vadd.f32 %v571_v53, %v2366_v48  ;;  %v573_v56 = vpop.f32.mrb[21].mxu0  ;;  %v2522_v8 = vpop.f32.mrb[20].mxu1 }
 0x10e   : > { %v574_v58 = vadd.f32 %v573_v56, %v2370_v49  ;;  %1830 = vmatprep.mubr.msk.f32.mxu1 %vm826_vm2, %v721_v51  ;;  %v2526_v10 = vpop.f32.mrb[21].mxu1 }
 0x10f   : > { %1042 = vmatmul.mubr.f32.gmra.mrb[50].mxu1 %v720_v54  ;;  %v722_v5 = vmax.f32 %v572_v55, 0.0  ;;  %v610_v54 = vadd.f32 %v2392_v4, %v2370_v49  ;;  %v608_v4 = vadd.f32 %v2388_v1, %v2366_v48  ;;  %v628_v1 = vadd.f32 %v2434_v37, %v2370_v49 }
 0x110   : > { %v723_v63 = vmax.f32 %v574_v58, 0.0  ;;  %v577_v3 = vpop.f32.mrb[22].mxu0  ;;  %v640_v37 = vadd.f32 %v2462_v0, %v2370_v49  ;;  %v652_v0 = vadd.f32 %v2490_v29, %v2370_v49 }
 0x111   : > { %v578_v6 = vadd.f32 %v577_v3, %v2366_v48  ;;  %v579_v7 = vpop.f32.mrb[23].mxu0  ;;  %v2530_v20 = vpop.f32.mrb[22].mxu1 }
 0x112   : > { %v580_v9 = vadd.f32 %v579_v7, %v2370_v49  ;;  %1831 = vmatprep.mubr.msk.f32.mxu1 %vm826_vm2, %v723_v63  ;;  %v2534_v22 = vpop.f32.mrb[23].mxu1  ;;  %v616_v7 = vadd.f32 %v2406_v15, %v2370_v49  ;;  %v614_v15 = vadd.f32 %v2402_v13, %v2366_v48  ;;  %v626_v13 = vadd.f32 %v2430_v35, %v2366_v48 }
 0x113   : > { %1048 = vmatmul.mubr.f32.gmra.mrb[52].mxu1 %v722_v5  ;;  %v724_v17 = vmax.f32 %v578_v6, 0.0  ;;  %v735_v6 = vmax.f32 %v610_v54, 0.0  ;;  %v638_v35 = vadd.f32 %v2458_v62, %v2366_v48  ;;  %v1267_v62 = vld [vmem:[%s2903_s5 + $0xb8] sm:$0xff]  ;;  %v664_v54 = vadd.f32 %v2518_v60, %v2370_v49 }
 0x114   : > { %v725_v11 = vmax.f32 %v580_v9, 0.0  ;;  %v583_v14 = vpop.f32.mrb[24].mxu0  ;;  %v676_v60 = vadd.f32 %v2534_v22, %v2370_v49 }
 0x115   : > { %v584_v18 = vadd.f32 %v583_v14, %v2366_v48  ;;  %v585_v19 = vpop.f32.mrb[25].mxu0  ;;  %v2537_v31 = vpop.f32.mrb[24].mxu1 }
 0x116   : > { %v586_v21 = vadd.f32 %v585_v19, %v2370_v49  ;;  %1832 = vmatprep.mubr.msk.f32.mxu1 %vm826_vm2, %v725_v11  ;;  %v2541_v33 = vpop.f32.mrb[25].mxu1  ;;  %v734_v19 = vmax.f32 %v608_v4, 0.0 }
 0x117   : > { %1054 = vmatmul.mubr.f32.gmra.mrb[54].mxu1 %v724_v17  ;;  %v726_v28 = vmax.f32 %v584_v18, 0.0  ;;  %v737_v17 = vmax.f32 %v616_v7, 0.0  ;;  %v622_v18 = vadd.f32 %v2420_v26, %v2370_v49  ;;  %v634_v26 = vadd.f32 %v2448_v52, %v2370_v49 }
 0x118   : > { %v727_v23 = vmax.f32 %v586_v21, 0.0  ;;  %v589_v25 = vpop.f32.mrb[26].mxu0  ;;  %v646_v52 = vadd.f32 %v2476_v16, %v2370_v49  ;;  %v1266_v16 = vld [vmem:[%s2903_s5 + $0xb0] sm:$0xff]  ;;  %v757_v7 = vmax.f32 %v676_v60, 0.0 }
 0x119   : > { %v590_v59 = vadd.f32 %v589_v25, %v2366_v48  ;;  %v591_v30 = vpop.f32.mrb[27].mxu0  ;;  %v2544_v42 = vpop.f32.mrb[26].mxu1  ;;  %v739_v21 = vmax.f32 %v622_v18, 0.0  ;;  %v620_v25 = vadd.f32 %v2416_v24, %v2366_v48  ;;  %v632_v24 = vadd.f32 %v2444_v50, %v2366_v48 }
 0x11a   : > { %v592_v32 = vadd.f32 %v591_v30, %v2370_v49  ;;  %1833 = vmatprep.mubr.msk.f32.mxu1 %vm826_vm2, %v727_v23  ;;  %v2548_v46 = vpop.f32.mrb[27].mxu1  ;;  %v736_v23 = vmax.f32 %v614_v15, 0.0  ;;  %v743_v30 = vmax.f32 %v634_v26, 0.0  ;;  %v644_v50 = vadd.f32 %v2472_v12, %v2366_v48 }
 0x11b   : > { %1060 = vmatmul.mubr.f32.gmra.mrb[56].mxu1 %v726_v28  ;;  %v728_v38 = vmax.f32 %v590_v59, 0.0  ;;  %v741_v28 = vmax.f32 %v628_v1, 0.0  ;;  %v738_v59 = vmax.f32 %v620_v25, 0.0  ;;  %v1969_v29 = vpack.c.bf16 %v1267_v62, %v1266_v16 }
 0x11c   : > { %v729_v34 = vmax.f32 %v592_v32, 0.0  ;;  %v595_v36 = vpop.f32.mrb[28].mxu0  ;;  %v740_v32 = vmax.f32 %v626_v13, 0.0  ;;  %v650_v12 = vadd.f32 %v2486_v27, %v2366_v48  ;;  %v688_v22 = vadd.f32 %v2548_v46, %v2370_v49 }
 0x11d   : > { %v596_v39 = vadd.f32 %v595_v36, %v2366_v48  ;;  %v597_v41 = vpop.f32.mrb[29].mxu0  ;;  %v2553_v61 = vpop.f32.mrb[28].mxu1  ;;  %v742_v36 = vmax.f32 %v632_v24, 0.0  ;;  %1970 = vmatpush1.bf16.msra.mxu0 %v1969_v29 }
 0x11e   : > { %v598_v43 = vadd.f32 %v597_v41, %v2370_v49  ;;  %1834 = vmatprep.mubr.msk.f32.mxu1 %vm826_vm2, %v729_v34  ;;  %v2557_v3 = vpop.f32.mrb[29].mxu1  ;;  %v745_v34 = vmax.f32 %v640_v37, 0.0  ;;  %v749_v41 = vmax.f32 %v652_v0, 0.0  ;;  %v761_v18 = vmax.f32 %v688_v22, 0.0 }
 0x11f   : > { %1066 = vmatmul.mubr.f32.gmra.mrb[58].mxu1 %v728_v38  ;;  %v730_v55 = vmax.f32 %v596_v39, 0.0  ;;  %v747_v38 = vmax.f32 %v646_v52, 0.0  ;;  %v744_v39 = vmax.f32 %v638_v35, 0.0 }
 0x120   : > { %v731_v51 = vmax.f32 %v598_v43, 0.0  ;;  %v601_v53 = vpop.f32.mrb[30].mxu0  ;;  %v658_v43 = vadd.f32 %v2504_v2, %v2370_v49  ;;  %v670_v2 = vadd.f32 %v2526_v10, %v2370_v49  ;;  %v682_v10 = vadd.f32 %v2541_v33, %v2370_v49 }
 0x121   : > { %v602_v56 = vadd.f32 %v601_v53, %v2366_v48  ;;  %v603_v58 = vpop.f32.mrb[31].mxu0  ;;  %v2563_v11 = vpop.f32.mrb[30].mxu1  ;;  %v694_v33 = vadd.f32 %v2557_v3, %v2370_v49 }
 0x122   : > { %v604_v63 = vadd.f32 %v603_v58, %v2370_v49  ;;  %1835 = vmatprep.mubr.msk.f32.mxu1 %vm826_vm2, %v731_v51  ;;  %v2566_v14 = vpop.f32.mrb[31].mxu1  ;;  %v746_v51 = vmax.f32 %v644_v50, 0.0  ;;  %v751_v53 = vmax.f32 %v658_v43, 0.0  ;;  %v753_v58 = vmax.f32 %v664_v54, 0.0 }
 0x123   : > { %1072 = vmatmul.mubr.f32.gmra.mrb[60].mxu1 %v730_v55  ;;  %v732_v9 = vmax.f32 %v602_v56, 0.0  ;;  %v748_v55 = vmax.f32 %v650_v12, 0.0  ;;  %v656_v56 = vadd.f32 %v2500_v40, %v2366_v48  ;;  %v668_v40 = vadd.f32 %v2522_v8, %v2366_v48 }
 0x124   : > { %v733_v5 = vmax.f32 %v604_v63, 0.0  ;;  %v662_v63 = vadd.f32 %v2514_v57, %v2366_v48  ;;  %v674_v57 = vadd.f32 %v2530_v20, %v2366_v48  ;;  %v759_v4 = vmax.f32 %v682_v10, 0.0 }
 0x125   : > { %v750_v27 = vmax.f32 %v656_v56, 0.0  ;;  %v680_v8 = vadd.f32 %v2537_v31, %v2366_v48  ;;  %v686_v20 = vadd.f32 %v2544_v42, %v2366_v48  ;;  %v763_v15 = vmax.f32 %v694_v33, 0.0 }
 0x126   : > { %1836 = vmatprep.mubr.msk.f32.mxu1 %vm826_vm2, %v733_v5  ;;  %v755_v5 = vmax.f32 %v670_v2, 0.0  ;;  %v700_v46 = vadd.f32 %v2566_v14, %v2370_v49  ;;  %v692_v31 = vadd.f32 %v2553_v61, %v2366_v48  ;;  %v814_v49 = vld [vmem:[%s2902_s4] sm:$0x3] }
 0x127   : > { %1078 = vmatmul.mubr.f32.gmra.mrb[62].mxu1 %v732_v9  ;;  %v754_v9 = vmax.f32 %v668_v40, 0.0  ;;  %v2653_v61 = vrot.slane %v814_v49, %v333_v45  ;;  %v2657_v14 = vrot.slane %v814_v49, %v337_v47 }
 0x128   : > { %1837 = vmatprep.mubr.msk.f32.mxu1 %vm826_vm2, %v735_v6  ;;  %v752_v6 = vmax.f32 %v662_v63, 0.0  ;;  %v765_v1 = vmax.f32 %v700_v46, 0.0  ;;  %v762_v3 = vmax.f32 %v692_v31, 0.0 }
 0x12b   : > { %1084 = vmatmul.mubr.f32.gmra.mrb[64].mxu1 %v734_v19  ;;  %v758_v19 = vmax.f32 %v680_v8, 0.0 }
 0x12c   : > { %1838 = vmatprep.mubr.msk.f32.mxu1 %vm826_vm2, %v737_v17  ;;  %v756_v17 = vmax.f32 %v674_v57, 0.0 }
 0x12f   : > { %1090 = vmatmul.mubr.f32.gmra.mrb[66].mxu1 %v736_v23  ;;  %v698_v23 = vadd.f32 %v2563_v11, %v2366_v48 }
 0x130   : > { %1839 = vmatprep.mubr.msk.f32.mxu1 %vm826_vm2, %v739_v21  ;;  %v760_v21 = vmax.f32 %v686_v20, 0.0 }
 0x131   : > { %v764_v42 = vmax.f32 %v698_v23, 0.0 }
 0x133   : > { %1096 = vmatmul.mubr.f32.gmra.mrb[68].mxu1 %v738_v59 }
 0x134   : > { %1840 = vmatprep.mubr.msk.f32.mxu1 %vm826_vm2, %v741_v28 }
 0x137   : > { %1102 = vmatmul.mubr.f32.gmra.mrb[70].mxu1 %v740_v32 }
 0x138   : > { %1841 = vmatprep.mubr.msk.f32.mxu1 %vm826_vm2, %v743_v30 }
 0x13b   : > { %1108 = vmatmul.mubr.f32.gmra.mrb[72].mxu1 %v742_v36 }
 0x13c   : > { %1842 = vmatprep.mubr.msk.f32.mxu1 %vm826_vm2, %v745_v34 }
 0x13f   : > { %1114 = vmatmul.mubr.f32.gmra.mrb[74].mxu1 %v744_v39 }
 0x140   : > { %1843 = vmatprep.mubr.msk.f32.mxu1 %vm826_vm2, %v747_v38 }
 0x143   : > { %1120 = vmatmul.mubr.f32.gmra.mrb[76].mxu1 %v746_v51 }
 0x144   : > { %1844 = vmatprep.mubr.msk.f32.mxu1 %vm826_vm2, %v749_v41 }
 0x147   : > { %1126 = vmatmul.mubr.f32.gmra.mrb[78].mxu1 %v748_v55 }
 0x148   : > { %1845 = vmatprep.mubr.msk.f32.mxu1 %vm826_vm2, %v751_v53 }
 0x14b   : > { %1132 = vmatmul.mubr.f32.gmra.mrb[80].mxu1 %v750_v27 }
 0x14c   : > { %1846 = vmatprep.mubr.msk.f32.mxu1 %vm826_vm2, %v753_v58 }
 0x14f   : > { %1138 = vmatmul.mubr.f32.gmra.mrb[82].mxu1 %v752_v6 }
 0x150   : > { %1847 = vmatprep.mubr.msk.f32.mxu1 %vm826_vm2, %v755_v5 }
 0x153   : > { %1144 = vmatmul.mubr.f32.gmra.mrb[84].mxu1 %v754_v9 }
 0x154   : > { %1848 = vmatprep.mubr.msk.f32.mxu1 %vm826_vm2, %v757_v7 }
 0x157   : > { %1150 = vmatmul.mubr.f32.gmra.mrb[86].mxu1 %v756_v17 }
 0x158   : > { %1849 = vmatprep.mubr.msk.f32.mxu1 %vm826_vm2, %v759_v4 }
 0x15b   : > { %1156 = vmatmul.mubr.f32.gmra.mrb[88].mxu1 %v758_v19 }
 0x15c   : > { %1850 = vmatprep.mubr.msk.f32.mxu1 %vm826_vm2, %v761_v18 }
 0x15f   : > { %1162 = vmatmul.mubr.f32.gmra.mrb[90].mxu1 %v760_v21 }
 0x160   : > { %1851 = vmatprep.mubr.msk.f32.mxu1 %vm826_vm2, %v763_v15 }
 0x163   : > { %1168 = vmatmul.mubr.f32.gmra.mrb[92].mxu1 %v762_v3 }
 0x164   : > { %1852 = vmatprep.mubr.msk.f32.mxu1 %vm826_vm2, %v765_v1 }
 0x167   : > { %1174 = vmatmul.mubr.f32.gmra.mrb[94].mxu1 %v764_v42 }
 0x1be   : > { %v989_v25 = vpop.f32.mrb[32].mxu1 }
 0x1bf   : > { %v990_v48 = vadd.f32 %v989_v25, %v2653_v61  ;;  %v991_v11 = vpop.f32.mrb[33].mxu1 }
 0x1c0   : > { %v992_v28 = vadd.f32 %v991_v11, %v2657_v14 }
 0x1c1   : > { %v1180_v13 = vmax.f32 %v990_v48, 0.0 }
 0x1c2   : > { %v1181_v26 = vmax.f32 %v992_v28, 0.0  ;;  %v995_v59 = vpop.f32.mrb[34].mxu1 }
 0x1c3   : > { %v996_v30 = vadd.f32 %v995_v59, %v2653_v61  ;;  %v997_v37 = vpop.f32.mrb[35].mxu1 }
 0x1c4   : > { %v998_v32 = vadd.f32 %v997_v37, %v2657_v14  ;;  %1853 = vmatprep.mubr.msk.f32.mxu0 %vm826_vm2, %v1181_v26 }
 0x1c5   : > { %1429 = vmatmul.mubr.f32.vlgmr.msra.gmra.mrb[32].mxu0 %v1180_v13  ;;  %v1182_v47 = vmax.f32 %v996_v30, 0.0 }
 0x1c6   : > { %v1183_v44 = vmax.f32 %v998_v32, 0.0  ;;  %v1001_v45 = vpop.f32.mrb[36].mxu1 }
 0x1c7   : > { %v1002_v24 = vadd.f32 %v1001_v45, %v2653_v61  ;;  %v1003_v34 = vpop.f32.mrb[37].mxu1 }
 0x1c8   : > { %v1004_v52 = vadd.f32 %v1003_v34, %v2657_v14  ;;  %1854 = vmatprep.mubr.msk.f32.mxu0 %vm826_vm2, %v1183_v44 }
 0x1c9   : > { %1434 = vmatmul.mubr.f32.gmra.mrb[34].mxu0 %v1182_v47  ;;  %v1184_v38 = vmax.f32 %v1002_v24, 0.0 }
 0x1ca   : > { %v1185_v36 = vmax.f32 %v1004_v52, 0.0  ;;  %v1007_v35 = vpop.f32.mrb[38].mxu1 }
 0x1cb   : > { %v1008_v0 = vadd.f32 %v1007_v35, %v2653_v61  ;;  %v1009_v39 = vpop.f32.mrb[39].mxu1 }
 0x1cc   : > { %v1010_v50 = vadd.f32 %v1009_v39, %v2657_v14  ;;  %1855 = vmatprep.mubr.msk.f32.mxu0 %vm826_vm2, %v1185_v36 }
 0x1cd   : > { %1439 = vmatmul.mubr.f32.gmra.mrb[36].mxu0 %v1184_v38  ;;  %v1186_v41 = vmax.f32 %v1008_v0, 0.0 }
 0x1ce   : > { %v1187_v16 = vmax.f32 %v1010_v50, 0.0  ;;  %v1013_v62 = vpop.f32.mrb[40].mxu1 }
 0x1cf   : > { %v1014_v43 = vadd.f32 %v1013_v62, %v2653_v61  ;;  %v1015_v29 = vpop.f32.mrb[41].mxu1 }
 0x1d0   : > { %v1016_v51 = vadd.f32 %v1015_v29, %v2657_v14  ;;  %1856 = vmatprep.mubr.msk.f32.mxu0 %vm826_vm2, %v1187_v16 }
 0x1d1   : > { %1444 = vmatmul.mubr.f32.gmra.mrb[38].mxu0 %v1186_v41  ;;  %v1188_v54 = vmax.f32 %v1014_v43, 0.0 }
 0x1d2   : > { %v1189_v12 = vmax.f32 %v1016_v51, 0.0  ;;  %v1019_v53 = vpop.f32.mrb[42].mxu1 }
 0x1d3   : > { %v1020_v55 = vadd.f32 %v1019_v53, %v2653_v61  ;;  %v1021_v56 = vpop.f32.mrb[43].mxu1 }
 0x1d4   : > { %v1022_v58 = vadd.f32 %v1021_v56, %v2657_v14  ;;  %1857 = vmatprep.mubr.msk.f32.mxu0 %vm826_vm2, %v1189_v12 }
 0x1d5   : > { %1449 = vmatmul.mubr.f32.gmra.mrb[40].mxu0 %v1188_v54  ;;  %v1190_v63 = vmax.f32 %v1020_v55, 0.0 }
 0x1d6   : > { %v1191_v2 = vmax.f32 %v1022_v58, 0.0  ;;  %v1025_v27 = vpop.f32.mrb[44].mxu1 }
 0x1d7   : > { %v1026_v5 = vadd.f32 %v1025_v27, %v2653_v61  ;;  %v1027_v60 = vpop.f32.mrb[45].mxu1 }
 0x1d8   : > { %v1028_v6 = vadd.f32 %v1027_v60, %v2657_v14  ;;  %1858 = vmatprep.mubr.msk.f32.mxu0 %vm826_vm2, %v1191_v2 }
 0x1d9   : > { %1454 = vmatmul.mubr.f32.gmra.mrb[42].mxu0 %v1190_v63  ;;  %v1192_v10 = vmax.f32 %v1026_v5, 0.0 }
 0x1da   : > { %v1193_v40 = vmax.f32 %v1028_v6, 0.0  ;;  %v1031_v7 = vpop.f32.mrb[46].mxu1 }
 0x1db   : > { %v1032_v9 = vadd.f32 %v1031_v7, %v2653_v61  ;;  %v1033_v57 = vpop.f32.mrb[47].mxu1 }
 0x1dc   : > { %v1034_v4 = vadd.f32 %v1033_v57, %v2657_v14  ;;  %1859 = vmatprep.mubr.msk.f32.mxu0 %vm826_vm2, %v1193_v40 }
 0x1dd   : > { %1459 = vmatmul.mubr.f32.gmra.mrb[44].mxu0 %v1192_v10  ;;  %v1194_v8 = vmax.f32 %v1032_v9, 0.0 }
 0x1de   : > { %v1195_v22 = vmax.f32 %v1034_v4, 0.0  ;;  %v1037_v17 = vpop.f32.mrb[48].mxu1 }
 0x1df   : > { %v1038_v18 = vadd.f32 %v1037_v17, %v2653_v61  ;;  %v1039_v33 = vpop.f32.mrb[49].mxu1 }
 0x1e0   : > { %v1040_v19 = vadd.f32 %v1039_v33, %v2657_v14  ;;  %1860 = vmatprep.mubr.msk.f32.mxu0 %vm826_vm2, %v1195_v22 }
 0x1e1   : > { %1464 = vmatmul.mubr.f32.gmra.mrb[46].mxu0 %v1194_v8  ;;  %v1196_v46 = vmax.f32 %v1038_v18, 0.0 }
 0x1e2   : > { %v1197_v20 = vmax.f32 %v1040_v19, 0.0  ;;  %v1043_v15 = vpop.f32.mrb[50].mxu1 }
 0x1e3   : > { %v1044_v21 = vadd.f32 %v1043_v15, %v2653_v61  ;;  %v1045_v31 = vpop.f32.mrb[51].mxu1 }
 0x1e4   : > { %v1046_v1 = vadd.f32 %v1045_v31, %v2657_v14  ;;  %1861 = vmatprep.mubr.msk.f32.mxu0 %vm826_vm2, %v1197_v20 }
 0x1e5   : > { %1469 = vmatmul.mubr.f32.gmra.mrb[48].mxu0 %v1196_v46  ;;  %v1198_v42 = vmax.f32 %v1044_v21, 0.0 }
 0x1e6   : > { %v1199_v3 = vmax.f32 %v1046_v1, 0.0  ;;  %v1049_v23 = vpop.f32.mrb[52].mxu1 }
 0x1e7   : > { %v1050_v49 = vadd.f32 %v1049_v23, %v2653_v61  ;;  %v1051_v25 = vpop.f32.mrb[53].mxu1 }
 0x1e8   : > { %v1052_v48 = vadd.f32 %v1051_v25, %v2657_v14  ;;  %1862 = vmatprep.mubr.msk.f32.mxu0 %vm826_vm2, %v1199_v3 }
 0x1e9   : > { %1474 = vmatmul.mubr.f32.gmra.mrb[50].mxu0 %v1198_v42  ;;  %v1200_v26 = vmax.f32 %v1050_v49, 0.0 }
 0x1ea   : > { %v1201_v11 = vmax.f32 %v1052_v48, 0.0  ;;  %v1055_v28 = vpop.f32.mrb[54].mxu1 }
 0x1eb   : > { %v1056_v59 = vadd.f32 %v1055_v28, %v2653_v61  ;;  %v1057_v13 = vpop.f32.mrb[55].mxu1 }
 0x1ec   : > { %v1058_v30 = vadd.f32 %v1057_v13, %v2657_v14  ;;  %1863 = vmatprep.mubr.msk.f32.mxu0 %vm826_vm2, %v1201_v11 }
 0x1ed   : > { %1479 = vmatmul.mubr.f32.gmra.mrb[52].mxu0 %v1200_v26  ;;  %v1202_v44 = vmax.f32 %v1056_v59, 0.0 }
 0x1ee   : > { %v1203_v37 = vmax.f32 %v1058_v30, 0.0  ;;  %v1061_v32 = vpop.f32.mrb[56].mxu1 }
 0x1ef   : > { %v1062_v45 = vadd.f32 %v1061_v32, %v2653_v61  ;;  %v1063_v47 = vpop.f32.mrb[57].mxu1 }
 0x1f0   : > { %v1064_v24 = vadd.f32 %v1063_v47, %v2657_v14  ;;  %1864 = vmatprep.mubr.msk.f32.mxu0 %vm826_vm2, %v1203_v37 }
 0x1f1   : > { %1484 = vmatmul.mubr.f32.gmra.mrb[54].mxu0 %v1202_v44  ;;  %v1204_v36 = vmax.f32 %v1062_v45, 0.0 }
 0x1f2   : > { %v1205_v34 = vmax.f32 %v1064_v24, 0.0  ;;  %v1067_v52 = vpop.f32.mrb[58].mxu1 }
 0x1f3   : > { %v1068_v35 = vadd.f32 %v1067_v52, %v2653_v61  ;;  %v1069_v38 = vpop.f32.mrb[59].mxu1 }
 0x1f4   : > { %v1070_v0 = vadd.f32 %v1069_v38, %v2657_v14  ;;  %1865 = vmatprep.mubr.msk.f32.mxu0 %vm826_vm2, %v1205_v34 }
 0x1f5   : > { %1489 = vmatmul.mubr.f32.gmra.mrb[56].mxu0 %v1204_v36  ;;  %v1206_v16 = vmax.f32 %v1068_v35, 0.0 }
 0x1f6   : > { %v1207_v39 = vmax.f32 %v1070_v0, 0.0  ;;  %v1073_v50 = vpop.f32.mrb[60].mxu1 }
 0x1f7   : > { %v1074_v62 = vadd.f32 %v1073_v50, %v2653_v61  ;;  %v1075_v41 = vpop.f32.mrb[61].mxu1 }
 0x1f8   : > { %v1076_v43 = vadd.f32 %v1075_v41, %v2657_v14  ;;  %1866 = vmatprep.mubr.msk.f32.mxu0 %vm826_vm2, %v1207_v39 }
 0x1f9   : > { %1494 = vmatmul.mubr.f32.gmra.mrb[58].mxu0 %v1206_v16  ;;  %v1208_v12 = vmax.f32 %v1074_v62, 0.0 }
 0x1fa   : > { %v1209_v29 = vmax.f32 %v1076_v43, 0.0  ;;  %v1079_v51 = vpop.f32.mrb[62].mxu1 }
 0x1fb   : > { %v1080_v53 = vadd.f32 %v1079_v51, %v2653_v61  ;;  %v1081_v54 = vpop.f32.mrb[63].mxu1 }
 0x1fc   : > { %v1082_v55 = vadd.f32 %v1081_v54, %v2657_v14  ;;  %1867 = vmatprep.mubr.msk.f32.mxu0 %vm826_vm2, %v1209_v29 }
 0x1fd   : > { %1499 = vmatmul.mubr.f32.gmra.mrb[60].mxu0 %v1208_v12  ;;  %v1210_v2 = vmax.f32 %v1080_v53, 0.0 }
 0x1fe   : > { %v1211_v56 = vmax.f32 %v1082_v55, 0.0  ;;  %v1085_v58 = vpop.f32.mrb[64].mxu1 }
 0x1ff   : > { %v1086_v27 = vadd.f32 %v1085_v58, %v2653_v61  ;;  %v1087_v63 = vpop.f32.mrb[65].mxu1 }
 0x200   : > { %v1088_v5 = vadd.f32 %v1087_v63, %v2657_v14  ;;  %1868 = vmatprep.mubr.msk.f32.mxu0 %vm826_vm2, %v1211_v56 }
 0x201   : > { %1504 = vmatmul.mubr.f32.gmra.mrb[62].mxu0 %v1210_v2  ;;  %v1212_v40 = vmax.f32 %v1086_v27, 0.0 }
 0x202   : > { %v1213_v60 = vmax.f32 %v1088_v5, 0.0  ;;  %v1091_v6 = vpop.f32.mrb[66].mxu1 }
 0x203   : > { %v1092_v7 = vadd.f32 %v1091_v6, %v2653_v61  ;;  %v1093_v10 = vpop.f32.mrb[67].mxu1 }
 0x204   : > { %v1094_v9 = vadd.f32 %v1093_v10, %v2657_v14  ;;  %1869 = vmatprep.mubr.msk.f32.mxu0 %vm826_vm2, %v1213_v60 }
 0x205   : > { %1509 = vmatmul.mubr.f32.gmra.mrb[64].mxu0 %v1212_v40  ;;  %v1214_v22 = vmax.f32 %v1092_v7, 0.0 }
 0x206   : > { %v1215_v57 = vmax.f32 %v1094_v9, 0.0  ;;  %v1097_v4 = vpop.f32.mrb[68].mxu1 }
 0x207   : > { %v1098_v17 = vadd.f32 %v1097_v4, %v2653_v61  ;;  %v1099_v8 = vpop.f32.mrb[69].mxu1 }
 0x208   : > { %v1100_v18 = vadd.f32 %v1099_v8, %v2657_v14  ;;  %1870 = vmatprep.mubr.msk.f32.mxu0 %vm826_vm2, %v1215_v57 }
 0x209   : > { %1514 = vmatmul.mubr.f32.gmra.mrb[66].mxu0 %v1214_v22  ;;  %v1216_v20 = vmax.f32 %v1098_v17, 0.0 }
 0x20a   : > { %v1217_v33 = vmax.f32 %v1100_v18, 0.0  ;;  %v1103_v19 = vpop.f32.mrb[70].mxu1 }
 0x20b   : > { %v1104_v15 = vadd.f32 %v1103_v19, %v2653_v61  ;;  %v1105_v46 = vpop.f32.mrb[71].mxu1 }
 0x20c   : > { %v1106_v21 = vadd.f32 %v1105_v46, %v2657_v14  ;;  %1871 = vmatprep.mubr.msk.f32.mxu0 %vm826_vm2, %v1217_v33 }
 0x20d   : > { %1519 = vmatmul.mubr.f32.gmra.mrb[68].mxu0 %v1216_v20  ;;  %v1218_v3 = vmax.f32 %v1104_v15, 0.0 }
 0x20e   : > { %v1219_v31 = vmax.f32 %v1106_v21, 0.0  ;;  %v1109_v1 = vpop.f32.mrb[72].mxu1 }
 0x20f   : > { %v1110_v23 = vadd.f32 %v1109_v1, %v2653_v61  ;;  %v1111_v42 = vpop.f32.mrb[73].mxu1 }
 0x210   : > { %v1112_v49 = vadd.f32 %v1111_v42, %v2657_v14  ;;  %1872 = vmatprep.mubr.msk.f32.mxu0 %vm826_vm2, %v1219_v31 }
 0x211   : > { %1524 = vmatmul.mubr.f32.gmra.mrb[70].mxu0 %v1218_v3  ;;  %v1220_v11 = vmax.f32 %v1110_v23, 0.0 }
 0x212   : > { %v1221_v25 = vmax.f32 %v1112_v49, 0.0  ;;  %v1115_v48 = vpop.f32.mrb[74].mxu1 }
 0x213   : > { %v1116_v28 = vadd.f32 %v1115_v48, %v2653_v61  ;;  %v1117_v26 = vpop.f32.mrb[75].mxu1 }
 0x214   : > { %v1118_v59 = vadd.f32 %v1117_v26, %v2657_v14  ;;  %1873 = vmatprep.mubr.msk.f32.mxu0 %vm826_vm2, %v1221_v25 }
 0x215   : > { %1529 = vmatmul.mubr.f32.gmra.mrb[72].mxu0 %v1220_v11  ;;  %v1222_v37 = vmax.f32 %v1116_v28, 0.0 }
 0x216   : > { %v1223_v13 = vmax.f32 %v1118_v59, 0.0  ;;  %v1121_v30 = vpop.f32.mrb[76].mxu1 }
 0x217   : > { %v1122_v32 = vadd.f32 %v1121_v30, %v2653_v61  ;;  %v1123_v44 = vpop.f32.mrb[77].mxu1 }
 0x218   : > { %v1124_v45 = vadd.f32 %v1123_v44, %v2657_v14  ;;  %1874 = vmatprep.mubr.msk.f32.mxu0 %vm826_vm2, %v1223_v13 }
 0x219   : > { %1534 = vmatmul.mubr.f32.gmra.mrb[74].mxu0 %v1222_v37  ;;  %v1224_v34 = vmax.f32 %v1122_v32, 0.0 }
 0x21a   : > { %v1225_v47 = vmax.f32 %v1124_v45, 0.0  ;;  %v1127_v24 = vpop.f32.mrb[78].mxu1 }
 0x21b   : > { %v1128_v52 = vadd.f32 %v1127_v24, %v2653_v61  ;;  %v1129_v36 = vpop.f32.mrb[79].mxu1 }
 0x21c   : > { %v1130_v35 = vadd.f32 %v1129_v36, %v2657_v14  ;;  %1875 = vmatprep.mubr.msk.f32.mxu0 %vm826_vm2, %v1225_v47 }
 0x21d   : > { %1539 = vmatmul.mubr.f32.gmra.mrb[76].mxu0 %v1224_v34  ;;  %v1226_v39 = vmax.f32 %v1128_v52, 0.0 }
 0x21e   : > { %v1227_v38 = vmax.f32 %v1130_v35, 0.0  ;;  %v1133_v0 = vpop.f32.mrb[80].mxu1 }
 0x21f   : > { %v1134_v50 = vadd.f32 %v1133_v0, %v2653_v61  ;;  %v1135_v16 = vpop.f32.mrb[81].mxu1 }
 0x220   : > { %v1136_v62 = vadd.f32 %v1135_v16, %v2657_v14  ;;  %1876 = vmatprep.mubr.msk.f32.mxu0 %vm826_vm2, %v1227_v38 }
 0x221   : > { %1544 = vmatmul.mubr.f32.gmra.mrb[78].mxu0 %v1226_v39  ;;  %v1228_v29 = vmax.f32 %v1134_v50, 0.0 }
 0x222   : > { %v1229_v41 = vmax.f32 %v1136_v62, 0.0  ;;  %v1139_v43 = vpop.f32.mrb[82].mxu1 }
 0x223   : > { %v1140_v51 = vadd.f32 %v1139_v43, %v2653_v61  ;;  %v1141_v12 = vpop.f32.mrb[83].mxu1 }
 0x224   : > { %v1142_v53 = vadd.f32 %v1141_v12, %v2657_v14  ;;  %1877 = vmatprep.mubr.msk.f32.mxu0 %vm826_vm2, %v1229_v41 }
 0x225   : > { %1549 = vmatmul.mubr.f32.gmra.mrb[80].mxu0 %v1228_v29  ;;  %v1230_v56 = vmax.f32 %v1140_v51, 0.0 }
 0x226   : > { %v1231_v54 = vmax.f32 %v1142_v53, 0.0  ;;  %v1145_v55 = vpop.f32.mrb[84].mxu1 }
 0x227   : > { %v1146_v58 = vadd.f32 %v1145_v55, %v2653_v61  ;;  %v1147_v2 = vpop.f32.mrb[85].mxu1 }
 0x228   : > { %v1148_v27 = vadd.f32 %v1147_v2, %v2657_v14  ;;  %1878 = vmatprep.mubr.msk.f32.mxu0 %vm826_vm2, %v1231_v54 }
 0x229   : > { %1554 = vmatmul.mubr.f32.gmra.mrb[82].mxu0 %v1230_v56  ;;  %v1232_v60 = vmax.f32 %v1146_v58, 0.0 }
 0x22a   : > { %v1233_v63 = vmax.f32 %v1148_v27, 0.0  ;;  %v1151_v5 = vpop.f32.mrb[86].mxu1 }
 0x22b   : > { %v1152_v6 = vadd.f32 %v1151_v5, %v2653_v61  ;;  %v1153_v40 = vpop.f32.mrb[87].mxu1 }
 0x22c   : > { %v1154_v7 = vadd.f32 %v1153_v40, %v2657_v14  ;;  %1879 = vmatprep.mubr.msk.f32.mxu0 %vm826_vm2, %v1233_v63 }
 0x22d   : > { %1559 = vmatmul.mubr.f32.gmra.mrb[84].mxu0 %v1232_v60  ;;  %v1234_v57 = vmax.f32 %v1152_v6, 0.0 }
 0x22e   : > { %v1235_v10 = vmax.f32 %v1154_v7, 0.0  ;;  %v1157_v9 = vpop.f32.mrb[88].mxu1 }
 0x22f   : > { %v1158_v4 = vadd.f32 %v1157_v9, %v2653_v61  ;;  %v1159_v22 = vpop.f32.mrb[89].mxu1 }
 0x230   : > { %v1160_v17 = vadd.f32 %v1159_v22, %v2657_v14  ;;  %1880 = vmatprep.mubr.msk.f32.mxu0 %vm826_vm2, %v1235_v10 }
 0x231   : > { %1564 = vmatmul.mubr.f32.gmra.mrb[86].mxu0 %v1234_v57  ;;  %v1236_v33 = vmax.f32 %v1158_v4, 0.0 }
 0x232   : > { %v1237_v8 = vmax.f32 %v1160_v17, 0.0  ;;  %v1163_v18 = vpop.f32.mrb[90].mxu1 }
 0x233   : > { %v1164_v19 = vadd.f32 %v1163_v18, %v2653_v61  ;;  %v1165_v20 = vpop.f32.mrb[91].mxu1 }
 0x234   : > { %v1166_v15 = vadd.f32 %v1165_v20, %v2657_v14  ;;  %1881 = vmatprep.mubr.msk.f32.mxu0 %vm826_vm2, %v1237_v8 }
 0x235   : > { %1569 = vmatmul.mubr.f32.gmra.mrb[88].mxu0 %v1236_v33  ;;  %v1238_v31 = vmax.f32 %v1164_v19, 0.0 }
 0x236   : > { %v1239_v46 = vmax.f32 %v1166_v15, 0.0  ;;  %v1169_v21 = vpop.f32.mrb[92].mxu1 }
 0x237   : > { %v1170_v1 = vadd.f32 %v1169_v21, %v2653_v61  ;;  %v1171_v3 = vpop.f32.mrb[93].mxu1 }
 0x238   : > { %v1172_v23 = vadd.f32 %v1171_v3, %v2657_v14  ;;  %1882 = vmatprep.mubr.msk.f32.mxu0 %vm826_vm2, %v1239_v46 }
 0x239   : > { %1574 = vmatmul.mubr.f32.gmra.mrb[90].mxu0 %v1238_v31  ;;  %v1240_v25 = vmax.f32 %v1170_v1, 0.0 }
 0x23a   : > { %v1241_v42 = vmax.f32 %v1172_v23, 0.0  ;;  %v1175_v49 = vpop.f32.mrb[94].mxu1 }
 0x23b   : > { %v1176_v48 = vadd.f32 %v1175_v49, %v2653_v61  ;;  %v1177_v11 = vpop.f32.mrb[95].mxu1 }
 0x23c   : > { %v1178_v28 = vadd.f32 %v1177_v11, %v2657_v14  ;;  %1883 = vmatprep.mubr.msk.f32.mxu0 %vm826_vm2, %v1241_v42 }
 0x23d   : > { %1579 = vmatmul.mubr.f32.gmra.mrb[92].mxu0 %v1240_v25  ;;  %v1242_v59 = vmax.f32 %v1176_v48, 0.0 }
 0x23e   : > { %v1243_v26 = vmax.f32 %v1178_v28, 0.0 }
 0x240   : > { %1884 = vmatprep.mubr.msk.f32.mxu0 %vm826_vm2, %v1243_v26 }
 0x241   : > { %1584 = vmatmul.mubr.f32.gmra.mrb[94].mxu0 %v1242_v59 }
 0x298   : > { %v1430_v61 = vpop.f32.mrb[32].mxu0 }
 0x299   : > { %1590 = vst.msk [vmem:[%s2759_s17] sm:$0xff] %vm1589_vm3, %v1430_v61  ;;  %1984 = vtanh.f32 %v1430_v61  ;;  %v1432_v14 = vpop.f32.mrb[33].mxu0 }
 0x29c   : > { %v1435_v13 = vpop.f32.mrb[34].mxu0 }
 0x29d   : > { %1591 = vst.msk [vmem:[%s2759_s17 + $0x8] sm:$0xff] %vm1589_vm3, %v1435_v13  ;;  %1986 = vtanh.f32 %v1435_v13  ;;  %v1437_v30 = vpop.f32.mrb[35].mxu0 }
 0x2a0   : > { %v1440_v37 = vpop.f32.mrb[36].mxu0 }
 0x2a1   : > { %1592 = vst.msk [vmem:[%s2759_s17 + $0x10] sm:$0xff] %vm1589_vm3, %v1440_v37  ;;  %1988 = vtanh.f32 %v1440_v37  ;;  %v1442_v32 = vpop.f32.mrb[37].mxu0 }
 0x2a3   : > { %v1985_v44 = vpop.eup %1984 }
 0x2a4   : > { %1654 = vst.msk [vmem:[%s2769_s20] sm:$0xff] %vm1589_vm3, %v1985_v44  ;;  %v1445_v45 = vpop.f32.mrb[38].mxu0 }
 0x2a5   : > { %1593 = vst.msk [vmem:[%s2759_s17 + $0x18] sm:$0xff] %vm1589_vm3, %v1445_v45  ;;  %1990 = vtanh.f32 %v1445_v45  ;;  %v1447_v47 = vpop.f32.mrb[39].mxu0 }
 0x2a7   : > { %v1987_v24 = vpop.eup %1986 }
 0x2a8   : > { %1655 = vst.msk [vmem:[%s2769_s20 + $0x8] sm:$0xff] %vm1589_vm3, %v1987_v24  ;;  %v1450_v34 = vpop.f32.mrb[40].mxu0 }
 0x2a9   : > { %1594 = vst.msk [vmem:[%s2759_s17 + $0x20] sm:$0xff] %vm1589_vm3, %v1450_v34  ;;  %1992 = vtanh.f32 %v1450_v34  ;;  %v1452_v52 = vpop.f32.mrb[41].mxu0 }
 0x2ab   : > { %v1989_v36 = vpop.eup %1988 }
 0x2ac   : > { %1656 = vst.msk [vmem:[%s2769_s20 + $0x10] sm:$0xff] %vm1589_vm3, %v1989_v36  ;;  %v1455_v35 = vpop.f32.mrb[42].mxu0 }
 0x2ad   : > { %1595 = vst.msk [vmem:[%s2759_s17 + $0x28] sm:$0xff] %vm1589_vm3, %v1455_v35  ;;  %1994 = vtanh.f32 %v1455_v35  ;;  %v1457_v38 = vpop.f32.mrb[43].mxu0 }
 0x2af   : > { %v1991_v0 = vpop.eup %1990 }
 0x2b0   : > { %1657 = vst.msk [vmem:[%s2769_s20 + $0x18] sm:$0xff] %vm1589_vm3, %v1991_v0  ;;  %v1460_v39 = vpop.f32.mrb[44].mxu0 }
 0x2b1   : > { %1596 = vst.msk [vmem:[%s2759_s17 + $0x30] sm:$0xff] %vm1589_vm3, %v1460_v39  ;;  %1996 = vtanh.f32 %v1460_v39  ;;  %v1462_v50 = vpop.f32.mrb[45].mxu0 }
 0x2b3   : > { %v1993_v16 = vpop.eup %1992 }
 0x2b4   : > { %1658 = vst.msk [vmem:[%s2769_s20 + $0x20] sm:$0xff] %vm1589_vm3, %v1993_v16  ;;  %v1465_v62 = vpop.f32.mrb[46].mxu0 }
 0x2b5   : > { %1597 = vst.msk [vmem:[%s2759_s17 + $0x38] sm:$0xff] %vm1589_vm3, %v1465_v62  ;;  %1998 = vtanh.f32 %v1465_v62  ;;  %v1467_v41 = vpop.f32.mrb[47].mxu0 }
 0x2b7   : > { %v1995_v43 = vpop.eup %1994 }
 0x2b8   : > { %1659 = vst.msk [vmem:[%s2769_s20 + $0x28] sm:$0xff] %vm1589_vm3, %v1995_v43  ;;  %v1470_v29 = vpop.f32.mrb[48].mxu0 }
 0x2b9   : > { %1598 = vst.msk [vmem:[%s2759_s17 + $0x40] sm:$0xff] %vm1589_vm3, %v1470_v29  ;;  %2000 = vtanh.f32 %v1470_v29  ;;  %v1472_v51 = vpop.f32.mrb[49].mxu0 }
 0x2bb   : > { %v1997_v12 = vpop.eup %1996 }
 0x2bc   : > { %1660 = vst.msk [vmem:[%s2769_s20 + $0x30] sm:$0xff] %vm1589_vm3, %v1997_v12  ;;  %v1475_v53 = vpop.f32.mrb[50].mxu0 }
 0x2bd   : > { %1599 = vst.msk [vmem:[%s2759_s17 + $0x48] sm:$0xff] %vm1589_vm3, %v1475_v53  ;;  %2002 = vtanh.f32 %v1475_v53  ;;  %v1477_v54 = vpop.f32.mrb[51].mxu0 }
 0x2bf   : > { %v1999_v55 = vpop.eup %1998 }
 0x2c0   : > { %1661 = vst.msk [vmem:[%s2769_s20 + $0x38] sm:$0xff] %vm1589_vm3, %v1999_v55  ;;  %v1480_v56 = vpop.f32.mrb[52].mxu0 }
 0x2c1   : > { %1600 = vst.msk [vmem:[%s2759_s17 + $0x50] sm:$0xff] %vm1589_vm3, %v1480_v56  ;;  %2004 = vtanh.f32 %v1480_v56  ;;  %v1482_v58 = vpop.f32.mrb[53].mxu0 }
 0x2c3   : > { %v2001_v2 = vpop.eup %2000 }
 0x2c4   : > { %1662 = vst.msk [vmem:[%s2769_s20 + $0x40] sm:$0xff] %vm1589_vm3, %v2001_v2  ;;  %v1485_v27 = vpop.f32.mrb[54].mxu0 }
 0x2c5   : > { %1601 = vst.msk [vmem:[%s2759_s17 + $0x58] sm:$0xff] %vm1589_vm3, %v1485_v27  ;;  %2006 = vtanh.f32 %v1485_v27  ;;  %v1487_v63 = vpop.f32.mrb[55].mxu0 }
 0x2c7   : > { %v2003_v5 = vpop.eup %2002 }
 0x2c8   : > { %1663 = vst.msk [vmem:[%s2769_s20 + $0x48] sm:$0xff] %vm1589_vm3, %v2003_v5  ;;  %v1490_v60 = vpop.f32.mrb[56].mxu0 }
 0x2c9   : > { %1602 = vst.msk [vmem:[%s2759_s17 + $0x60] sm:$0xff] %vm1589_vm3, %v1490_v60  ;;  %2008 = vtanh.f32 %v1490_v60  ;;  %v1492_v6 = vpop.f32.mrb[57].mxu0 }
 0x2cb   : > { %v2005_v40 = vpop.eup %2004 }
 0x2cc   : > { %1664 = vst.msk [vmem:[%s2769_s20 + $0x50] sm:$0xff] %vm1589_vm3, %v2005_v40  ;;  %v1495_v7 = vpop.f32.mrb[58].mxu0 }
 0x2cd   : > { %1603 = vst.msk [vmem:[%s2759_s17 + $0x68] sm:$0xff] %vm1589_vm3, %v1495_v7  ;;  %2010 = vtanh.f32 %v1495_v7  ;;  %v1497_v10 = vpop.f32.mrb[59].mxu0 }
 0x2cf   : > { %v2007_v9 = vpop.eup %2006 }
 0x2d0   : > { %1665 = vst.msk [vmem:[%s2769_s20 + $0x58] sm:$0xff] %vm1589_vm3, %v2007_v9  ;;  %v1500_v57 = vpop.f32.mrb[60].mxu0 }
 0x2d1   : > { %1604 = vst.msk [vmem:[%s2759_s17 + $0x70] sm:$0xff] %vm1589_vm3, %v1500_v57  ;;  %2012 = vtanh.f32 %v1500_v57  ;;  %v1502_v4 = vpop.f32.mrb[61].mxu0 }
 0x2d3   : > { %v2009_v22 = vpop.eup %2008 }
 0x2d4   : > { %1666 = vst.msk [vmem:[%s2769_s20 + $0x60] sm:$0xff] %vm1589_vm3, %v2009_v22  ;;  %v1505_v17 = vpop.f32.mrb[62].mxu0 }
 0x2d5   : > { %1605 = vst.msk [vmem:[%s2759_s17 + $0x78] sm:$0xff] %vm1589_vm3, %v1505_v17  ;;  %2014 = vtanh.f32 %v1505_v17  ;;  %v1507_v8 = vpop.f32.mrb[63].mxu0 }
 0x2d7   : > { %v2011_v18 = vpop.eup %2010 }
 0x2d8   : > { %1667 = vst.msk [vmem:[%s2769_s20 + $0x68] sm:$0xff] %vm1589_vm3, %v2011_v18  ;;  %v1510_v33 = vpop.f32.mrb[64].mxu0 }
 0x2d9   : > { %1606 = vst.msk [vmem:[%s2759_s17 + $0x80] sm:$0xff] %vm1589_vm3, %v1510_v33  ;;  %2016 = vtanh.f32 %v1510_v33  ;;  %v1512_v19 = vpop.f32.mrb[65].mxu0 }
 0x2db   : > { %v2013_v20 = vpop.eup %2012 }
 0x2dc   : > { %1668 = vst.msk [vmem:[%s2769_s20 + $0x70] sm:$0xff] %vm1589_vm3, %v2013_v20  ;;  %v1515_v15 = vpop.f32.mrb[66].mxu0 }
 0x2dd   : > { %1607 = vst.msk [vmem:[%s2759_s17 + $0x88] sm:$0xff] %vm1589_vm3, %v1515_v15  ;;  %2018 = vtanh.f32 %v1515_v15  ;;  %v1517_v46 = vpop.f32.mrb[67].mxu0 }
 0x2df   : > { %v2015_v21 = vpop.eup %2014 }
 0x2e0   : > { %1669 = vst.msk [vmem:[%s2769_s20 + $0x78] sm:$0xff] %vm1589_vm3, %v2015_v21  ;;  %v1520_v31 = vpop.f32.mrb[68].mxu0 }
 0x2e1   : > { %1608 = vst.msk [vmem:[%s2759_s17 + $0x90] sm:$0xff] %vm1589_vm3, %v1520_v31  ;;  %2020 = vtanh.f32 %v1520_v31  ;;  %v1522_v1 = vpop.f32.mrb[69].mxu0 }
 0x2e3   : > { %v2017_v3 = vpop.eup %2016 }
 0x2e4   : > { %1670 = vst.msk [vmem:[%s2769_s20 + $0x80] sm:$0xff] %vm1589_vm3, %v2017_v3  ;;  %v1525_v23 = vpop.f32.mrb[70].mxu0 }
 0x2e5   : > { %1609 = vst.msk [vmem:[%s2759_s17 + $0x98] sm:$0xff] %vm1589_vm3, %v1525_v23  ;;  %2022 = vtanh.f32 %v1525_v23  ;;  %v1527_v42 = vpop.f32.mrb[71].mxu0 }
 0x2e7   : > { %v2019_v49 = vpop.eup %2018 }
 0x2e8   : > { %1671 = vst.msk [vmem:[%s2769_s20 + $0x88] sm:$0xff] %vm1589_vm3, %v2019_v49  ;;  %v1530_v25 = vpop.f32.mrb[72].mxu0 }
 0x2e9   : > { %1610 = vst.msk [vmem:[%s2759_s17 + $0xa0] sm:$0xff] %vm1589_vm3, %v1530_v25  ;;  %2024 = vtanh.f32 %v1530_v25  ;;  %v1532_v48 = vpop.f32.mrb[73].mxu0 }
 0x2eb   : > { %v2021_v11 = vpop.eup %2020 }
 0x2ec   : > { %1672 = vst.msk [vmem:[%s2769_s20 + $0x90] sm:$0xff] %vm1589_vm3, %v2021_v11  ;;  %v1535_v28 = vpop.f32.mrb[74].mxu0 }
 0x2ed   : > { %1611 = vst.msk [vmem:[%s2759_s17 + $0xa8] sm:$0xff] %vm1589_vm3, %v1535_v28  ;;  %2026 = vtanh.f32 %v1535_v28  ;;  %v1537_v26 = vpop.f32.mrb[75].mxu0 }
 0x2ef   : > { %v2023_v59 = vpop.eup %2022 }
 0x2f0   : > { %1673 = vst.msk [vmem:[%s2769_s20 + $0x98] sm:$0xff] %vm1589_vm3, %v2023_v59  ;;  %v1540_v61 = vpop.f32.mrb[76].mxu0 }
 0x2f1   : > { %1612 = vst.msk [vmem:[%s2759_s17 + $0xb0] sm:$0xff] %vm1589_vm3, %v1540_v61  ;;  %2028 = vtanh.f32 %v1540_v61  ;;  %v1542_v14 = vpop.f32.mrb[77].mxu0 }
 0x2f3   : > { %v2025_v13 = vpop.eup %2024 }
 0x2f4   : > { %1674 = vst.msk [vmem:[%s2769_s20 + $0xa0] sm:$0xff] %vm1589_vm3, %v2025_v13  ;;  %v1545_v30 = vpop.f32.mrb[78].mxu0 }
 0x2f5   : > { %1613 = vst.msk [vmem:[%s2759_s17 + $0xb8] sm:$0xff] %vm1589_vm3, %v1545_v30  ;;  %2030 = vtanh.f32 %v1545_v30  ;;  %v1547_v37 = vpop.f32.mrb[79].mxu0 }
 0x2f7   : > { %v2027_v32 = vpop.eup %2026 }
 0x2f8   : > { %1675 = vst.msk [vmem:[%s2769_s20 + $0xa8] sm:$0xff] %vm1589_vm3, %v2027_v32  ;;  %v1550_v44 = vpop.f32.mrb[80].mxu0 }
 0x2f9   : > { %1614 = vst.msk [vmem:[%s2759_s17 + $0xc0] sm:$0xff] %vm1589_vm3, %v1550_v44  ;;  %2032 = vtanh.f32 %v1550_v44  ;;  %v1552_v45 = vpop.f32.mrb[81].mxu0 }
 0x2fb   : > { %v2029_v47 = vpop.eup %2028 }
 0x2fc   : > { %1676 = vst.msk [vmem:[%s2769_s20 + $0xb0] sm:$0xff] %vm1589_vm3, %v2029_v47  ;;  %v1555_v24 = vpop.f32.mrb[82].mxu0 }
 0x2fd   : > { %1615 = vst.msk [vmem:[%s2759_s17 + $0xc8] sm:$0xff] %vm1589_vm3, %v1555_v24  ;;  %2034 = vtanh.f32 %v1555_v24  ;;  %v1557_v34 = vpop.f32.mrb[83].mxu0 }
 0x2ff   : > { %v2031_v52 = vpop.eup %2030 }
 0x300   : > { %1677 = vst.msk [vmem:[%s2769_s20 + $0xb8] sm:$0xff] %vm1589_vm3, %v2031_v52  ;;  %v1560_v36 = vpop.f32.mrb[84].mxu0 }
 0x301   : > { %1616 = vst.msk [vmem:[%s2759_s17 + $0xd0] sm:$0xff] %vm1589_vm3, %v1560_v36  ;;  %2036 = vtanh.f32 %v1560_v36  ;;  %v1562_v35 = vpop.f32.mrb[85].mxu0 }
 0x303   : > { %v2033_v38 = vpop.eup %2032 }
 0x304   : > { %1678 = vst.msk [vmem:[%s2769_s20 + $0xc0] sm:$0xff] %vm1589_vm3, %v2033_v38  ;;  %v1565_v0 = vpop.f32.mrb[86].mxu0 }
 0x305   : > { %1617 = vst.msk [vmem:[%s2759_s17 + $0xd8] sm:$0xff] %vm1589_vm3, %v1565_v0  ;;  %2038 = vtanh.f32 %v1565_v0  ;;  %v1567_v39 = vpop.f32.mrb[87].mxu0 }
 0x307   : > { %v2035_v50 = vpop.eup %2034 }
 0x308   : > { %1679 = vst.msk [vmem:[%s2769_s20 + $0xc8] sm:$0xff] %vm1589_vm3, %v2035_v50  ;;  %v1570_v16 = vpop.f32.mrb[88].mxu0 }
 0x309   : > { %1618 = vst.msk [vmem:[%s2759_s17 + $0xe0] sm:$0xff] %vm1589_vm3, %v1570_v16  ;;  %2040 = vtanh.f32 %v1570_v16  ;;  %v1572_v62 = vpop.f32.mrb[89].mxu0 }
 0x30b   : > { %v2037_v41 = vpop.eup %2036 }
 0x30c   : > { %1680 = vst.msk [vmem:[%s2769_s20 + $0xd0] sm:$0xff] %vm1589_vm3, %v2037_v41  ;;  %v1575_v43 = vpop.f32.mrb[90].mxu0 }
 0x30d   : > { %1619 = vst.msk [vmem:[%s2759_s17 + $0xe8] sm:$0xff] %vm1589_vm3, %v1575_v43  ;;  %2042 = vtanh.f32 %v1575_v43  ;;  %v1577_v29 = vpop.f32.mrb[91].mxu0 }
 0x30f   : > { %v2039_v51 = vpop.eup %2038 }
 0x310   : > { %1681 = vst.msk [vmem:[%s2769_s20 + $0xd8] sm:$0xff] %vm1589_vm3, %v2039_v51  ;;  %v1580_v12 = vpop.f32.mrb[92].mxu0 }
 0x311   : > { %1620 = vst.msk [vmem:[%s2759_s17 + $0xf0] sm:$0xff] %vm1589_vm3, %v1580_v12  ;;  %2044 = vtanh.f32 %v1580_v12  ;;  %v1582_v53 = vpop.f32.mrb[93].mxu0 }
 0x313   : > { %v2041_v54 = vpop.eup %2040 }
 0x314   : > { %1682 = vst.msk [vmem:[%s2769_s20 + $0xe0] sm:$0xff] %vm1589_vm3, %v2041_v54  ;;  %v1585_v55 = vpop.f32.mrb[94].mxu0 }
 0x315   : > { %1621 = vst.msk [vmem:[%s2759_s17 + $0xf8] sm:$0xff] %vm1589_vm3, %v1585_v55  ;;  %2046 = vtanh.f32 %v1585_v55  ;;  %v1587_v56 = vpop.f32.mrb[95].mxu0 }
 0x317   : > { %v2043_v58 = vpop.eup %2042 }
 0x318   : > { %1683 = vst.msk [vmem:[%s2769_s20 + $0xe8] sm:$0xff] %vm1589_vm3, %v2043_v58 }
 0x31b   : > { %v2045_v2 = vpop.eup %2044 }
 0x31c   : > { %1684 = vst.msk [vmem:[%s2769_s20 + $0xf0] sm:$0xff] %vm1589_vm3, %v2045_v2 }
 0x31f   : > { %v2047_v27 = vpop.eup %2046 }
 0x320   : > { %1685 = vst.msk [vmem:[%s2769_s20 + $0xf8] sm:$0xff] %vm1589_vm3, %v2047_v27 }
 0x321 PF: > { %s18_s24 = sadd.s32 1, %s2054_s24  }
 0x322   : > { %p15_p4 = scmp.ge.s32.totalorder %s18_s24, 4  }
 0x324   :  { %17 = sbr.rel (!%p15_p4) target bundleno = 1 (0x1), region = 86 }

</bundles_post_ra>
